<compile_context>
chip_gen: v7x
topology: tpu7x:2x2x1
jax: 0.10.0
libtpu: 0.0.40
codegen_flags: <defaults>
</compile_context>

<pallas_src>
import numpy as np

import jax
import jax.numpy as jnp
from jax.experimental import pallas as pl
from jax.experimental.pallas import tpu as pltpu


# ---------------------------------------------------------------------------
# Fused kernel: refs = (x, [S, M, bias] * n_layers, out)
# ---------------------------------------------------------------------------
def _lenet_kernel(*refs):
    x_ref, o_ref = refs[0], refs[-1]
    layer_refs = refs[1:-1]
    n_layers = len(layer_refs) // 3

    h = x_ref[...]                                      # bf16, [B*H, W*C]
    for li in range(n_layers):
        s_ref, m_ref, b_ref = layer_refs[3 * li: 3 * li + 3]
        xb = h.astype(jnp.bfloat16)
        acc = None
        for kh in range(s_ref.shape[0]):
            # Row gather (stride / zero-pad in H) as a 0/1 matmul — exact in bf16.
            rows = jnp.dot(s_ref[kh], xb,
                           preferred_element_type=jnp.float32).astype(jnp.bfloat16)
            # Width taps + channel mixing folded into one dense matmul.
            part = jnp.dot(rows, m_ref[kh], preferred_element_type=jnp.float32)
            acc = part if acc is None else acc + part
        acc = acc + b_ref[...]                          # f32 bias, broadcast over rows
        if li < n_layers - 1:
            # Numerically stable sigmoid; tanh runs on the EUP.
            acc = 0.5 * (jnp.tanh(0.5 * acc) + 1.0)
        h = acc
    o_ref[...] = h.astype(o_ref.dtype)


# ---------------------------------------------------------------------------
# One-time weight prep (host / plain JAX): fold stride+pad into constants.
# ---------------------------------------------------------------------------
def _row_select(B, H, OH, stride, pad, KH):
    """S[kh, b*OH+oh, b*H+i] = 1 iff i == stride*oh + kh - pad (pad rows drop out)."""
    S = np.zeros((KH, B * OH, B * H), np.float32)
    for kh in range(KH):
        for b in range(B):
            for oh in range(OH):
                i = stride * oh + kh - pad
                if 0 <= i < H:
                    S[kh, b * OH + oh, b * H + i] = 1.0
    return jnp.asarray(S, dtype=jnp.bfloat16)


def _col_weights(wt, W, OW, stride, pad):
    """M[kh, jw*Cin+c, ow*O+o] = wt[o, c, kh, jw - stride*ow + pad], 0 outside kernel."""
    O, Cin, KH, KW = wt.shape
    jw = np.arange(W)[:, None, None]
    ow = np.arange(OW)[None, :, None]
    kw = np.arange(KW)[None, None, :]
    taps = jnp.asarray(jw == stride * ow + kw - pad, dtype=jnp.float32)  # [W, OW, KW]
    M = jnp.einsum("jwk,ochk->hjcwo", taps, wt.astype(jnp.float32))      # [KH,W,Cin,OW,O]
    return M.reshape(KH, W * Cin, OW * O).astype(jnp.bfloat16)


def prepare_lenet(params, *, batch, height, width, channel, num_classes=10):
    layers = []
    H, W, C = height, width, channel
    for name, stride, pad in (("conv1", 2, 2), ("conv2", 2, 2), ("conv3", 1, 2)):
        wt, bias = params[name + "_w"], params[name + "_b"]
        O, Cin, KH, KW = wt.shape
        assert Cin == C
        OH = (H + 2 * pad - KH) // stride + 1
        OW = (W + 2 * pad - KW) // stride + 1
        layers.append((
            _row_select(batch, H, OH, stride, pad, KH),
            _col_weights(wt, W, OW, stride, pad),
            jnp.tile(bias.astype(jnp.float32), OW).reshape(1, OW * O),
        ))
        H, W, C = OH, OW, O
    # FC is the same primitive with KH=H, KW=W, OH=OW=1, no pad, no activation.
    wt_fc = params["fc_w"].reshape(num_classes, C, H, W)   # PyTorch C-major flatten
    layers.append((
        _row_select(batch, H, 1, 1, 0, H),
        _col_weights(wt_fc, W, 1, 1, 0),
        params["fc_b"].astype(jnp.float32).reshape(1, num_classes),
    ))
    return layers


# ---------------------------------------------------------------------------
# Forward: one pallas_call for the whole network.
# ---------------------------------------------------------------------------
def lenet_forward(prepared, x):
    B, C, H, W = x.shape
    num_classes = prepared[-1][2].shape[1]

    # NCHW -> lane-dense [B*H, W*C] slab (single tiny transpose of the raw input).
    x2d = jnp.transpose(x, (0, 2, 3, 1)).reshape(B * H, W * C).astype(jnp.bfloat16)

    operands = [x2d]
    for s, m, brow in prepared:
        operands.extend((s, m, brow))

    in_specs = [pl.BlockSpec(op.shape, (lambda i, n=op.ndim: (0,) * n))
                for op in operands]

    return pl.pallas_call(
        _lenet_kernel,
        out_shape=jax.ShapeDtypeStruct((B, num_classes), jnp.float32),
        grid=(1,),
        in_specs=in_specs,
        out_specs=pl.BlockSpec((B, num_classes), lambda i: (0, 0)),
        compiler_params=pltpu.CompilerParams(dimension_semantics=("arbitrary",)),
    )(*operands)


# ---------------------------------------------------------------------------
# Parameter construction (deterministic, PyTorch-default-style uniform init)
# ---------------------------------------------------------------------------
def init_lenet_params(key, channel=3, hidden=768, num_classes=10):
    def uni(k, shape, fan_in):
        bound = 1.0 / jnp.sqrt(jnp.float32(fan_in))
        return jax.random.uniform(k, shape, jnp.float32, -bound, bound)

    ks = jax.random.split(key, 8)
    return {
        "conv1_w": uni(ks[0], (12, channel, 5, 5), channel * 25),
        "conv1_b": uni(ks[1], (12,), channel * 25),
        "conv2_w": uni(ks[2], (12, 12, 5, 5), 12 * 25),
        "conv2_b": uni(ks[3], (12,), 12 * 25),
        "conv3_w": uni(ks[4], (12, 12, 5, 5), 12 * 25),
        "conv3_b": uni(ks[5], (12,), 12 * 25),
        "fc_w":    uni(ks[6], (num_classes, hidden), hidden),   # torch Linear: [out, in]
        "fc_b":    uni(ks[7], (num_classes,), hidden),
    }


# ---------------------------------------------------------------------------
# Pure-JAX reference (f32) for a correctness self-check
# ---------------------------------------------------------------------------
def lenet_reference(params, x):
    prec = jax.lax.Precision.HIGHEST

    def conv(h, w, b, stride, pad):
        out = jax.lax.conv_general_dilated(
            h, w, window_strides=(stride, stride),
            padding=((pad, pad), (pad, pad)),
            dimension_numbers=("NCHW", "OIHW", "NCHW"),
            precision=prec)
        return out + b.reshape(1, -1, 1, 1)

    h = jax.nn.sigmoid(conv(x, params["conv1_w"], params["conv1_b"], 2, 2))
    h = jax.nn.sigmoid(conv(h, params["conv2_w"], params["conv2_b"], 2, 2))
    h = jax.nn.sigmoid(conv(h, params["conv3_w"], params["conv3_b"], 1, 2))
    feat = h.reshape(h.shape[0], -1)
    return jnp.dot(feat, params["fc_w"].T, precision=prec) + params["fc_b"]


if __name__ == "__main__":
    key = jax.random.PRNGKey(0)
    k_param, k_x = jax.random.split(key)

    # channel=3, hidden=768  =>  32x32 input: 32 -> 16 -> 8 -> 8, 12*8*8 = 768
    B, C, H, W = 2, 3, 32, 32
    x = jax.random.normal(k_x, (B, C, H, W), jnp.float32)
    params = init_lenet_params(k_param, channel=C, hidden=768, num_classes=10)

    prepared = prepare_lenet(params, batch=B, height=H, width=W, channel=C,
                             num_classes=10)

    fwd = jax.jit(lenet_forward)
    out = jax.block_until_ready(fwd(prepared, x))

    assert out.shape == (B, 10), out.shape
    assert bool(jnp.all(jnp.isfinite(out)))

    ref = lenet_reference(params, x)
    max_err = float(jnp.max(jnp.abs(out - ref)))
    assert max_err < 5e-2, f"kernel/reference mismatch: {max_err}"
    print("KERNEL_OK")
</pallas_src>

<mosaic_0001>
module attributes {stable_mosaic.version = 11 : i64} {
  func.func @_lenet_kernel(%arg0: i32, %arg1: memref<64x96xbf16, #tpu.memory_space<vmem>>, %arg2: memref<5x32x64xbf16, #tpu.memory_space<vmem>>, %arg3: memref<5x96x192xbf16, #tpu.memory_space<vmem>>, %arg4: memref<1x192xf32, #tpu.memory_space<vmem>>, %arg5: memref<5x16x32xbf16, #tpu.memory_space<vmem>>, %arg6: memref<5x192x96xbf16, #tpu.memory_space<vmem>>, %arg7: memref<1x96xf32, #tpu.memory_space<vmem>>, %arg8: memref<5x16x16xbf16, #tpu.memory_space<vmem>>, %arg9: memref<5x96x96xbf16, #tpu.memory_space<vmem>>, %arg10: memref<1x96xf32, #tpu.memory_space<vmem>>, %arg11: memref<8x2x16xbf16, #tpu.memory_space<vmem>>, %arg12: memref<8x96x10xbf16, #tpu.memory_space<vmem>>, %arg13: memref<1x10xf32, #tpu.memory_space<vmem>>, %arg14: memref<2x10xf32, #tpu.memory_space<vmem>>) attributes {dimension_semantics = [#tpu.dimension_semantics<arbitrary>], iteration_bounds = array<i64: 1>, scalar_prefetch = 0 : i64, scratch_operands = 0 : i64, tpu.core_type = #tpu.core_type<tc>, window_params = [{pipeline_mode = #tpu.pipeline_mode<synchronous>, transform_indices = @transform_0, window_bounds = array<i64: 64, 96>}, {pipeline_mode = #tpu.pipeline_mode<synchronous>, transform_indices = @transform_1, window_bounds = array<i64: 5, 32, 64>}, {pipeline_mode = #tpu.pipeline_mode<synchronous>, transform_indices = @transform_2, window_bounds = array<i64: 5, 96, 192>}, {pipeline_mode = #tpu.pipeline_mode<synchronous>, transform_indices = @transform_3, window_bounds = array<i64: 1, 192>}, {pipeline_mode = #tpu.pipeline_mode<synchronous>, transform_indices = @transform_4, window_bounds = array<i64: 5, 16, 32>}, {pipeline_mode = #tpu.pipeline_mode<synchronous>, transform_indices = @transform_5, window_bounds = array<i64: 5, 192, 96>}, {pipeline_mode = #tpu.pipeline_mode<synchronous>, transform_indices = @transform_6, window_bounds = array<i64: 1, 96>}, {pipeline_mode = #tpu.pipeline_mode<synchronous>, transform_indices = @transform_7, window_bounds = array<i64: 5, 16, 16>}, {pipeline_mode = #tpu.pipeline_mode<synchronous>, transform_indices = @transform_8, window_bounds = array<i64: 5, 96, 96>}, {pipeline_mode = #tpu.pipeline_mode<synchronous>, transform_indices = @transform_9, window_bounds = array<i64: 1, 96>}, {pipeline_mode = #tpu.pipeline_mode<synchronous>, transform_indices = @transform_10, window_bounds = array<i64: 8, 2, 16>}, {pipeline_mode = #tpu.pipeline_mode<synchronous>, transform_indices = @transform_11, window_bounds = array<i64: 8, 96, 10>}, {pipeline_mode = #tpu.pipeline_mode<synchronous>, transform_indices = @transform_12, window_bounds = array<i64: 1, 10>}, {pipeline_mode = #tpu.pipeline_mode<synchronous>, transform_indices = @transform_13, window_bounds = array<i64: 2, 10>}]} {
    %c0 = arith.constant 0 : index
    %c0_0 = arith.constant 0 : index
    %0 = vector.load %arg1[%c0, %c0_0] : memref<64x96xbf16, #tpu.memory_space<vmem>>, vector<64x96xbf16>
    %c0_1 = arith.constant 0 : index
    %c0_2 = arith.constant 0 : index
    %c0_3 = arith.constant 0 : index
    %1 = vector.load %arg2[%c0_1, %c0_2, %c0_3] : memref<5x32x64xbf16, #tpu.memory_space<vmem>>, vector<1x32x64xbf16>
    %2 = vector.shape_cast %1 : vector<1x32x64xbf16> to vector<32x64xbf16>
    %cst = arith.constant dense<0.000000e+00> : vector<32x96xf32>
    %3 = tpu.matmul %2, %0, %cst {dimension_numbers = #tpu.dot_dimension_numbers<[1], [0], [0], [1], [0, 0, 1, 1], [], []>} : vector<32x64xbf16>, vector<64x96xbf16>, vector<32x96xf32> -> vector<32x96xf32>
    %4 = arith.truncf %3 : vector<32x96xf32> to vector<32x96xbf16>
    %c0_4 = arith.constant 0 : index
    %c0_5 = arith.constant 0 : index
    %c0_6 = arith.constant 0 : index
    %5 = vector.load %arg3[%c0_4, %c0_5, %c0_6] : memref<5x96x192xbf16, #tpu.memory_space<vmem>>, vector<1x96x192xbf16>
    %6 = vector.shape_cast %5 : vector<1x96x192xbf16> to vector<96x192xbf16>
    %cst_7 = arith.constant dense<0.000000e+00> : vector<32x192xf32>
    %7 = tpu.matmul %4, %6, %cst_7 {dimension_numbers = #tpu.dot_dimension_numbers<[1], [0], [0], [1], [0, 0, 1, 1], [], []>} : vector<32x96xbf16>, vector<96x192xbf16>, vector<32x192xf32> -> vector<32x192xf32>
    %c1 = arith.constant 1 : index
    %c0_8 = arith.constant 0 : index
    %c0_9 = arith.constant 0 : index
    %8 = vector.load %arg2[%c1, %c0_8, %c0_9] : memref<5x32x64xbf16, #tpu.memory_space<vmem>>, vector<1x32x64xbf16>
    %9 = vector.shape_cast %8 : vector<1x32x64xbf16> to vector<32x64xbf16>
    %cst_10 = arith.constant dense<0.000000e+00> : vector<32x96xf32>
    %10 = tpu.matmul %9, %0, %cst_10 {dimension_numbers = #tpu.dot_dimension_numbers<[1], [0], [0], [1], [0, 0, 1, 1], [], []>} : vector<32x64xbf16>, vector<64x96xbf16>, vector<32x96xf32> -> vector<32x96xf32>
    %11 = arith.truncf %10 : vector<32x96xf32> to vector<32x96xbf16>
    %c1_11 = arith.constant 1 : index
    %c0_12 = arith.constant 0 : index
    %c0_13 = arith.constant 0 : index
    %12 = vector.load %arg3[%c1_11, %c0_12, %c0_13] : memref<5x96x192xbf16, #tpu.memory_space<vmem>>, vector<1x96x192xbf16>
    %13 = vector.shape_cast %12 : vector<1x96x192xbf16> to vector<96x192xbf16>
    %cst_14 = arith.constant dense<0.000000e+00> : vector<32x192xf32>
    %14 = tpu.matmul %11, %13, %cst_14 {dimension_numbers = #tpu.dot_dimension_numbers<[1], [0], [0], [1], [0, 0, 1, 1], [], []>} : vector<32x96xbf16>, vector<96x192xbf16>, vector<32x192xf32> -> vector<32x192xf32>
    %15 = arith.addf %7, %14 : vector<32x192xf32>
    %c2 = arith.constant 2 : index
    %c0_15 = arith.constant 0 : index
    %c0_16 = arith.constant 0 : index
    %16 = vector.load %arg2[%c2, %c0_15, %c0_16] : memref<5x32x64xbf16, #tpu.memory_space<vmem>>, vector<1x32x64xbf16>
    %17 = vector.shape_cast %16 : vector<1x32x64xbf16> to vector<32x64xbf16>
    %cst_17 = arith.constant dense<0.000000e+00> : vector<32x96xf32>
    %18 = tpu.matmul %17, %0, %cst_17 {dimension_numbers = #tpu.dot_dimension_numbers<[1], [0], [0], [1], [0, 0, 1, 1], [], []>} : vector<32x64xbf16>, vector<64x96xbf16>, vector<32x96xf32> -> vector<32x96xf32>
    %19 = arith.truncf %18 : vector<32x96xf32> to vector<32x96xbf16>
    %c2_18 = arith.constant 2 : index
    %c0_19 = arith.constant 0 : index
    %c0_20 = arith.constant 0 : index
    %20 = vector.load %arg3[%c2_18, %c0_19, %c0_20] : memref<5x96x192xbf16, #tpu.memory_space<vmem>>, vector<1x96x192xbf16>
    %21 = vector.shape_cast %20 : vector<1x96x192xbf16> to vector<96x192xbf16>
    %cst_21 = arith.constant dense<0.000000e+00> : vector<32x192xf32>
    %22 = tpu.matmul %19, %21, %cst_21 {dimension_numbers = #tpu.dot_dimension_numbers<[1], [0], [0], [1], [0, 0, 1, 1], [], []>} : vector<32x96xbf16>, vector<96x192xbf16>, vector<32x192xf32> -> vector<32x192xf32>
    %23 = arith.addf %15, %22 : vector<32x192xf32>
    %c3 = arith.constant 3 : index
    %c0_22 = arith.constant 0 : index
    %c0_23 = arith.constant 0 : index
    %24 = vector.load %arg2[%c3, %c0_22, %c0_23] : memref<5x32x64xbf16, #tpu.memory_space<vmem>>, vector<1x32x64xbf16>
    %25 = vector.shape_cast %24 : vector<1x32x64xbf16> to vector<32x64xbf16>
    %cst_24 = arith.constant dense<0.000000e+00> : vector<32x96xf32>
    %26 = tpu.matmul %25, %0, %cst_24 {dimension_numbers = #tpu.dot_dimension_numbers<[1], [0], [0], [1], [0, 0, 1, 1], [], []>} : vector<32x64xbf16>, vector<64x96xbf16>, vector<32x96xf32> -> vector<32x96xf32>
    %27 = arith.truncf %26 : vector<32x96xf32> to vector<32x96xbf16>
    %c3_25 = arith.constant 3 : index
    %c0_26 = arith.constant 0 : index
    %c0_27 = arith.constant 0 : index
    %28 = vector.load %arg3[%c3_25, %c0_26, %c0_27] : memref<5x96x192xbf16, #tpu.memory_space<vmem>>, vector<1x96x192xbf16>
    %29 = vector.shape_cast %28 : vector<1x96x192xbf16> to vector<96x192xbf16>
    %cst_28 = arith.constant dense<0.000000e+00> : vector<32x192xf32>
    %30 = tpu.matmul %27, %29, %cst_28 {dimension_numbers = #tpu.dot_dimension_numbers<[1], [0], [0], [1], [0, 0, 1, 1], [], []>} : vector<32x96xbf16>, vector<96x192xbf16>, vector<32x192xf32> -> vector<32x192xf32>
    %31 = arith.addf %23, %30 : vector<32x192xf32>
    %c4 = arith.constant 4 : index
    %c0_29 = arith.constant 0 : index
    %c0_30 = arith.constant 0 : index
    %32 = vector.load %arg2[%c4, %c0_29, %c0_30] : memref<5x32x64xbf16, #tpu.memory_space<vmem>>, vector<1x32x64xbf16>
    %33 = vector.shape_cast %32 : vector<1x32x64xbf16> to vector<32x64xbf16>
    %cst_31 = arith.constant dense<0.000000e+00> : vector<32x96xf32>
    %34 = tpu.matmul %33, %0, %cst_31 {dimension_numbers = #tpu.dot_dimension_numbers<[1], [0], [0], [1], [0, 0, 1, 1], [], []>} : vector<32x64xbf16>, vector<64x96xbf16>, vector<32x96xf32> -> vector<32x96xf32>
    %35 = arith.truncf %34 : vector<32x96xf32> to vector<32x96xbf16>
    %c4_32 = arith.constant 4 : index
    %c0_33 = arith.constant 0 : index
    %c0_34 = arith.constant 0 : index
    %36 = vector.load %arg3[%c4_32, %c0_33, %c0_34] : memref<5x96x192xbf16, #tpu.memory_space<vmem>>, vector<1x96x192xbf16>
    %37 = vector.shape_cast %36 : vector<1x96x192xbf16> to vector<96x192xbf16>
    %cst_35 = arith.constant dense<0.000000e+00> : vector<32x192xf32>
    %38 = tpu.matmul %35, %37, %cst_35 {dimension_numbers = #tpu.dot_dimension_numbers<[1], [0], [0], [1], [0, 0, 1, 1], [], []>} : vector<32x96xbf16>, vector<96x192xbf16>, vector<32x192xf32> -> vector<32x192xf32>
    %39 = arith.addf %31, %38 : vector<32x192xf32>
    %c0_36 = arith.constant 0 : index
    %c0_37 = arith.constant 0 : index
    %40 = vector.load %arg4[%c0_36, %c0_37] : memref<1x192xf32, #tpu.memory_space<vmem>>, vector<1x192xf32>
    %41 = vector.broadcast %40 : vector<1x192xf32> to vector<32x192xf32>
    %42 = arith.addf %39, %41 : vector<32x192xf32>
    %cst_38 = arith.constant 5.000000e-01 : f32
    %43 = vector.broadcast %cst_38 : f32 to vector<32x192xf32>
    %44 = arith.mulf %43, %42 : vector<32x192xf32>
    %45 = math.tanh %44 : vector<32x192xf32>
    %cst_39 = arith.constant 1.000000e+00 : f32
    %46 = vector.broadcast %cst_39 : f32 to vector<32x192xf32>
    %47 = arith.addf %45, %46 : vector<32x192xf32>
    %cst_40 = arith.constant 5.000000e-01 : f32
    %48 = vector.broadcast %cst_40 : f32 to vector<32x192xf32>
    %49 = arith.mulf %48, %47 : vector<32x192xf32>
    %50 = arith.truncf %49 : vector<32x192xf32> to vector<32x192xbf16>
    %c0_41 = arith.constant 0 : index
    %c0_42 = arith.constant 0 : index
    %c0_43 = arith.constant 0 : index
    %51 = vector.load %arg5[%c0_41, %c0_42, %c0_43] : memref<5x16x32xbf16, #tpu.memory_space<vmem>>, vector<1x16x32xbf16>
    %52 = vector.shape_cast %51 : vector<1x16x32xbf16> to vector<16x32xbf16>
    %cst_44 = arith.constant dense<0.000000e+00> : vector<16x192xf32>
    %53 = tpu.matmul %52, %50, %cst_44 {dimension_numbers = #tpu.dot_dimension_numbers<[1], [0], [0], [1], [0, 0, 1, 1], [], []>} : vector<16x32xbf16>, vector<32x192xbf16>, vector<16x192xf32> -> vector<16x192xf32>
    %54 = arith.truncf %53 : vector<16x192xf32> to vector<16x192xbf16>
    %c0_45 = arith.constant 0 : index
    %c0_46 = arith.constant 0 : index
    %c0_47 = arith.constant 0 : index
    %55 = vector.load %arg6[%c0_45, %c0_46, %c0_47] : memref<5x192x96xbf16, #tpu.memory_space<vmem>>, vector<1x192x96xbf16>
    %56 = vector.shape_cast %55 : vector<1x192x96xbf16> to vector<192x96xbf16>
    %cst_48 = arith.constant dense<0.000000e+00> : vector<16x96xf32>
    %57 = tpu.matmul %54, %56, %cst_48 {dimension_numbers = #tpu.dot_dimension_numbers<[1], [0], [0], [1], [0, 0, 1, 1], [], []>} : vector<16x192xbf16>, vector<192x96xbf16>, vector<16x96xf32> -> vector<16x96xf32>
    %c1_49 = arith.constant 1 : index
    %c0_50 = arith.constant 0 : index
    %c0_51 = arith.constant 0 : index
    %58 = vector.load %arg5[%c1_49, %c0_50, %c0_51] : memref<5x16x32xbf16, #tpu.memory_space<vmem>>, vector<1x16x32xbf16>
    %59 = vector.shape_cast %58 : vector<1x16x32xbf16> to vector<16x32xbf16>
    %cst_52 = arith.constant dense<0.000000e+00> : vector<16x192xf32>
    %60 = tpu.matmul %59, %50, %cst_52 {dimension_numbers = #tpu.dot_dimension_numbers<[1], [0], [0], [1], [0, 0, 1, 1], [], []>} : vector<16x32xbf16>, vector<32x192xbf16>, vector<16x192xf32> -> vector<16x192xf32>
    %61 = arith.truncf %60 : vector<16x192xf32> to vector<16x192xbf16>
    %c1_53 = arith.constant 1 : index
    %c0_54 = arith.constant 0 : index
    %c0_55 = arith.constant 0 : index
    %62 = vector.load %arg6[%c1_53, %c0_54, %c0_55] : memref<5x192x96xbf16, #tpu.memory_space<vmem>>, vector<1x192x96xbf16>
    %63 = vector.shape_cast %62 : vector<1x192x96xbf16> to vector<192x96xbf16>
    %cst_56 = arith.constant dense<0.000000e+00> : vector<16x96xf32>
    %64 = tpu.matmul %61, %63, %cst_56 {dimension_numbers = #tpu.dot_dimension_numbers<[1], [0], [0], [1], [0, 0, 1, 1], [], []>} : vector<16x192xbf16>, vector<192x96xbf16>, vector<16x96xf32> -> vector<16x96xf32>
    %65 = arith.addf %57, %64 : vector<16x96xf32>
    %c2_57 = arith.constant 2 : index
    %c0_58 = arith.constant 0 : index
    %c0_59 = arith.constant 0 : index
    %66 = vector.load %arg5[%c2_57, %c0_58, %c0_59] : memref<5x16x32xbf16, #tpu.memory_space<vmem>>, vector<1x16x32xbf16>
    %67 = vector.shape_cast %66 : vector<1x16x32xbf16> to vector<16x32xbf16>
    %cst_60 = arith.constant dense<0.000000e+00> : vector<16x192xf32>
    %68 = tpu.matmul %67, %50, %cst_60 {dimension_numbers = #tpu.dot_dimension_numbers<[1], [0], [0], [1], [0, 0, 1, 1], [], []>} : vector<16x32xbf16>, vector<32x192xbf16>, vector<16x192xf32> -> vector<16x192xf32>
    %69 = arith.truncf %68 : vector<16x192xf32> to vector<16x192xbf16>
    %c2_61 = arith.constant 2 : index
    %c0_62 = arith.constant 0 : index
    %c0_63 = arith.constant 0 : index
    %70 = vector.load %arg6[%c2_61, %c0_62, %c0_63] : memref<5x192x96xbf16, #tpu.memory_space<vmem>>, vector<1x192x96xbf16>
    %71 = vector.shape_cast %70 : vector<1x192x96xbf16> to vector<192x96xbf16>
    %cst_64 = arith.constant dense<0.000000e+00> : vector<16x96xf32>
    %72 = tpu.matmul %69, %71, %cst_64 {dimension_numbers = #tpu.dot_dimension_numbers<[1], [0], [0], [1], [0, 0, 1, 1], [], []>} : vector<16x192xbf16>, vector<192x96xbf16>, vector<16x96xf32> -> vector<16x96xf32>
    %73 = arith.addf %65, %72 : vector<16x96xf32>
    %c3_65 = arith.constant 3 : index
    %c0_66 = arith.constant 0 : index
    %c0_67 = arith.constant 0 : index
    %74 = vector.load %arg5[%c3_65, %c0_66, %c0_67] : memref<5x16x32xbf16, #tpu.memory_space<vmem>>, vector<1x16x32xbf16>
    %75 = vector.shape_cast %74 : vector<1x16x32xbf16> to vector<16x32xbf16>
    %cst_68 = arith.constant dense<0.000000e+00> : vector<16x192xf32>
    %76 = tpu.matmul %75, %50, %cst_68 {dimension_numbers = #tpu.dot_dimension_numbers<[1], [0], [0], [1], [0, 0, 1, 1], [], []>} : vector<16x32xbf16>, vector<32x192xbf16>, vector<16x192xf32> -> vector<16x192xf32>
    %77 = arith.truncf %76 : vector<16x192xf32> to vector<16x192xbf16>
    %c3_69 = arith.constant 3 : index
    %c0_70 = arith.constant 0 : index
    %c0_71 = arith.constant 0 : index
    %78 = vector.load %arg6[%c3_69, %c0_70, %c0_71] : memref<5x192x96xbf16, #tpu.memory_space<vmem>>, vector<1x192x96xbf16>
    %79 = vector.shape_cast %78 : vector<1x192x96xbf16> to vector<192x96xbf16>
    %cst_72 = arith.constant dense<0.000000e+00> : vector<16x96xf32>
    %80 = tpu.matmul %77, %79, %cst_72 {dimension_numbers = #tpu.dot_dimension_numbers<[1], [0], [0], [1], [0, 0, 1, 1], [], []>} : vector<16x192xbf16>, vector<192x96xbf16>, vector<16x96xf32> -> vector<16x96xf32>
    %81 = arith.addf %73, %80 : vector<16x96xf32>
    %c4_73 = arith.constant 4 : index
    %c0_74 = arith.constant 0 : index
    %c0_75 = arith.constant 0 : index
    %82 = vector.load %arg5[%c4_73, %c0_74, %c0_75] : memref<5x16x32xbf16, #tpu.memory_space<vmem>>, vector<1x16x32xbf16>
    %83 = vector.shape_cast %82 : vector<1x16x32xbf16> to vector<16x32xbf16>
    %cst_76 = arith.constant dense<0.000000e+00> : vector<16x192xf32>
    %84 = tpu.matmul %83, %50, %cst_76 {dimension_numbers = #tpu.dot_dimension_numbers<[1], [0], [0], [1], [0, 0, 1, 1], [], []>} : vector<16x32xbf16>, vector<32x192xbf16>, vector<16x192xf32> -> vector<16x192xf32>
    %85 = arith.truncf %84 : vector<16x192xf32> to vector<16x192xbf16>
    %c4_77 = arith.constant 4 : index
    %c0_78 = arith.constant 0 : index
    %c0_79 = arith.constant 0 : index
    %86 = vector.load %arg6[%c4_77, %c0_78, %c0_79] : memref<5x192x96xbf16, #tpu.memory_space<vmem>>, vector<1x192x96xbf16>
    %87 = vector.shape_cast %86 : vector<1x192x96xbf16> to vector<192x96xbf16>
    %cst_80 = arith.constant dense<0.000000e+00> : vector<16x96xf32>
    %88 = tpu.matmul %85, %87, %cst_80 {dimension_numbers = #tpu.dot_dimension_numbers<[1], [0], [0], [1], [0, 0, 1, 1], [], []>} : vector<16x192xbf16>, vector<192x96xbf16>, vector<16x96xf32> -> vector<16x96xf32>
    %89 = arith.addf %81, %88 : vector<16x96xf32>
    %c0_81 = arith.constant 0 : index
    %c0_82 = arith.constant 0 : index
    %90 = vector.load %arg7[%c0_81, %c0_82] : memref<1x96xf32, #tpu.memory_space<vmem>>, vector<1x96xf32>
    %91 = vector.broadcast %90 : vector<1x96xf32> to vector<16x96xf32>
    %92 = arith.addf %89, %91 : vector<16x96xf32>
    %cst_83 = arith.constant 5.000000e-01 : f32
    %93 = vector.broadcast %cst_83 : f32 to vector<16x96xf32>
    %94 = arith.mulf %93, %92 : vector<16x96xf32>
    %95 = math.tanh %94 : vector<16x96xf32>
    %cst_84 = arith.constant 1.000000e+00 : f32
    %96 = vector.broadcast %cst_84 : f32 to vector<16x96xf32>
    %97 = arith.addf %95, %96 : vector<16x96xf32>
    %cst_85 = arith.constant 5.000000e-01 : f32
    %98 = vector.broadcast %cst_85 : f32 to vector<16x96xf32>
    %99 = arith.mulf %98, %97 : vector<16x96xf32>
    %100 = arith.truncf %99 : vector<16x96xf32> to vector<16x96xbf16>
    %c0_86 = arith.constant 0 : index
    %c0_87 = arith.constant 0 : index
    %c0_88 = arith.constant 0 : index
    %101 = vector.load %arg8[%c0_86, %c0_87, %c0_88] : memref<5x16x16xbf16, #tpu.memory_space<vmem>>, vector<1x16x16xbf16>
    %102 = vector.shape_cast %101 : vector<1x16x16xbf16> to vector<16x16xbf16>
    %cst_89 = arith.constant dense<0.000000e+00> : vector<16x96xf32>
    %103 = tpu.matmul %102, %100, %cst_89 {dimension_numbers = #tpu.dot_dimension_numbers<[1], [0], [0], [1], [0, 0, 1, 1], [], []>} : vector<16x16xbf16>, vector<16x96xbf16>, vector<16x96xf32> -> vector<16x96xf32>
    %104 = arith.truncf %103 : vector<16x96xf32> to vector<16x96xbf16>
    %c0_90 = arith.constant 0 : index
    %c0_91 = arith.constant 0 : index
    %c0_92 = arith.constant 0 : index
    %105 = vector.load %arg9[%c0_90, %c0_91, %c0_92] : memref<5x96x96xbf16, #tpu.memory_space<vmem>>, vector<1x96x96xbf16>
    %106 = vector.shape_cast %105 : vector<1x96x96xbf16> to vector<96x96xbf16>
    %cst_93 = arith.constant dense<0.000000e+00> : vector<16x96xf32>
    %107 = tpu.matmul %104, %106, %cst_93 {dimension_numbers = #tpu.dot_dimension_numbers<[1], [0], [0], [1], [0, 0, 1, 1], [], []>} : vector<16x96xbf16>, vector<96x96xbf16>, vector<16x96xf32> -> vector<16x96xf32>
    %c1_94 = arith.constant 1 : index
    %c0_95 = arith.constant 0 : index
    %c0_96 = arith.constant 0 : index
    %108 = vector.load %arg8[%c1_94, %c0_95, %c0_96] : memref<5x16x16xbf16, #tpu.memory_space<vmem>>, vector<1x16x16xbf16>
    %109 = vector.shape_cast %108 : vector<1x16x16xbf16> to vector<16x16xbf16>
    %cst_97 = arith.constant dense<0.000000e+00> : vector<16x96xf32>
    %110 = tpu.matmul %109, %100, %cst_97 {dimension_numbers = #tpu.dot_dimension_numbers<[1], [0], [0], [1], [0, 0, 1, 1], [], []>} : vector<16x16xbf16>, vector<16x96xbf16>, vector<16x96xf32> -> vector<16x96xf32>
    %111 = arith.truncf %110 : vector<16x96xf32> to vector<16x96xbf16>
    %c1_98 = arith.constant 1 : index
    %c0_99 = arith.constant 0 : index
    %c0_100 = arith.constant 0 : index
    %112 = vector.load %arg9[%c1_98, %c0_99, %c0_100] : memref<5x96x96xbf16, #tpu.memory_space<vmem>>, vector<1x96x96xbf16>
    %113 = vector.shape_cast %112 : vector<1x96x96xbf16> to vector<96x96xbf16>
    %cst_101 = arith.constant dense<0.000000e+00> : vector<16x96xf32>
    %114 = tpu.matmul %111, %113, %cst_101 {dimension_numbers = #tpu.dot_dimension_numbers<[1], [0], [0], [1], [0, 0, 1, 1], [], []>} : vector<16x96xbf16>, vector<96x96xbf16>, vector<16x96xf32> -> vector<16x96xf32>
    %115 = arith.addf %107, %114 : vector<16x96xf32>
    %c2_102 = arith.constant 2 : index
    %c0_103 = arith.constant 0 : index
    %c0_104 = arith.constant 0 : index
    %116 = vector.load %arg8[%c2_102, %c0_103, %c0_104] : memref<5x16x16xbf16, #tpu.memory_space<vmem>>, vector<1x16x16xbf16>
    %117 = vector.shape_cast %116 : vector<1x16x16xbf16> to vector<16x16xbf16>
    %cst_105 = arith.constant dense<0.000000e+00> : vector<16x96xf32>
    %118 = tpu.matmul %117, %100, %cst_105 {dimension_numbers = #tpu.dot_dimension_numbers<[1], [0], [0], [1], [0, 0, 1, 1], [], []>} : vector<16x16xbf16>, vector<16x96xbf16>, vector<16x96xf32> -> vector<16x96xf32>
    %119 = arith.truncf %118 : vector<16x96xf32> to vector<16x96xbf16>
    %c2_106 = arith.constant 2 : index
    %c0_107 = arith.constant 0 : index
    %c0_108 = arith.constant 0 : index
    %120 = vector.load %arg9[%c2_106, %c0_107, %c0_108] : memref<5x96x96xbf16, #tpu.memory_space<vmem>>, vector<1x96x96xbf16>
    %121 = vector.shape_cast %120 : vector<1x96x96xbf16> to vector<96x96xbf16>
    %cst_109 = arith.constant dense<0.000000e+00> : vector<16x96xf32>
    %122 = tpu.matmul %119, %121, %cst_109 {dimension_numbers = #tpu.dot_dimension_numbers<[1], [0], [0], [1], [0, 0, 1, 1], [], []>} : vector<16x96xbf16>, vector<96x96xbf16>, vector<16x96xf32> -> vector<16x96xf32>
    %123 = arith.addf %115, %122 : vector<16x96xf32>
    %c3_110 = arith.constant 3 : index
    %c0_111 = arith.constant 0 : index
    %c0_112 = arith.constant 0 : index
    %124 = vector.load %arg8[%c3_110, %c0_111, %c0_112] : memref<5x16x16xbf16, #tpu.memory_space<vmem>>, vector<1x16x16xbf16>
    %125 = vector.shape_cast %124 : vector<1x16x16xbf16> to vector<16x16xbf16>
    %cst_113 = arith.constant dense<0.000000e+00> : vector<16x96xf32>
    %126 = tpu.matmul %125, %100, %cst_113 {dimension_numbers = #tpu.dot_dimension_numbers<[1], [0], [0], [1], [0, 0, 1, 1], [], []>} : vector<16x16xbf16>, vector<16x96xbf16>, vector<16x96xf32> -> vector<16x96xf32>
    %127 = arith.truncf %126 : vector<16x96xf32> to vector<16x96xbf16>
    %c3_114 = arith.constant 3 : index
    %c0_115 = arith.constant 0 : index
    %c0_116 = arith.constant 0 : index
    %128 = vector.load %arg9[%c3_114, %c0_115, %c0_116] : memref<5x96x96xbf16, #tpu.memory_space<vmem>>, vector<1x96x96xbf16>
    %129 = vector.shape_cast %128 : vector<1x96x96xbf16> to vector<96x96xbf16>
    %cst_117 = arith.constant dense<0.000000e+00> : vector<16x96xf32>
    %130 = tpu.matmul %127, %129, %cst_117 {dimension_numbers = #tpu.dot_dimension_numbers<[1], [0], [0], [1], [0, 0, 1, 1], [], []>} : vector<16x96xbf16>, vector<96x96xbf16>, vector<16x96xf32> -> vector<16x96xf32>
    %131 = arith.addf %123, %130 : vector<16x96xf32>
    %c4_118 = arith.constant 4 : index
    %c0_119 = arith.constant 0 : index
    %c0_120 = arith.constant 0 : index
    %132 = vector.load %arg8[%c4_118, %c0_119, %c0_120] : memref<5x16x16xbf16, #tpu.memory_space<vmem>>, vector<1x16x16xbf16>
    %133 = vector.shape_cast %132 : vector<1x16x16xbf16> to vector<16x16xbf16>
    %cst_121 = arith.constant dense<0.000000e+00> : vector<16x96xf32>
    %134 = tpu.matmul %133, %100, %cst_121 {dimension_numbers = #tpu.dot_dimension_numbers<[1], [0], [0], [1], [0, 0, 1, 1], [], []>} : vector<16x16xbf16>, vector<16x96xbf16>, vector<16x96xf32> -> vector<16x96xf32>
    %135 = arith.truncf %134 : vector<16x96xf32> to vector<16x96xbf16>
    %c4_122 = arith.constant 4 : index
    %c0_123 = arith.constant 0 : index
    %c0_124 = arith.constant 0 : index
    %136 = vector.load %arg9[%c4_122, %c0_123, %c0_124] : memref<5x96x96xbf16, #tpu.memory_space<vmem>>, vector<1x96x96xbf16>
    %137 = vector.shape_cast %136 : vector<1x96x96xbf16> to vector<96x96xbf16>
    %cst_125 = arith.constant dense<0.000000e+00> : vector<16x96xf32>
    %138 = tpu.matmul %135, %137, %cst_125 {dimension_numbers = #tpu.dot_dimension_numbers<[1], [0], [0], [1], [0, 0, 1, 1], [], []>} : vector<16x96xbf16>, vector<96x96xbf16>, vector<16x96xf32> -> vector<16x96xf32>
    %139 = arith.addf %131, %138 : vector<16x96xf32>
    %c0_126 = arith.constant 0 : index
    %c0_127 = arith.constant 0 : index
    %140 = vector.load %arg10[%c0_126, %c0_127] : memref<1x96xf32, #tpu.memory_space<vmem>>, vector<1x96xf32>
    %141 = vector.broadcast %140 : vector<1x96xf32> to vector<16x96xf32>
    %142 = arith.addf %139, %141 : vector<16x96xf32>
    %cst_128 = arith.constant 5.000000e-01 : f32
    %143 = vector.broadcast %cst_128 : f32 to vector<16x96xf32>
    %144 = arith.mulf %143, %142 : vector<16x96xf32>
    %145 = math.tanh %144 : vector<16x96xf32>
    %cst_129 = arith.constant 1.000000e+00 : f32
    %146 = vector.broadcast %cst_129 : f32 to vector<16x96xf32>
    %147 = arith.addf %145, %146 : vector<16x96xf32>
    %cst_130 = arith.constant 5.000000e-01 : f32
    %148 = vector.broadcast %cst_130 : f32 to vector<16x96xf32>
    %149 = arith.mulf %148, %147 : vector<16x96xf32>
    %150 = arith.truncf %149 : vector<16x96xf32> to vector<16x96xbf16>
    %c0_131 = arith.constant 0 : index
    %c0_132 = arith.constant 0 : index
    %c0_133 = arith.constant 0 : index
    %151 = vector.load %arg11[%c0_131, %c0_132, %c0_133] : memref<8x2x16xbf16, #tpu.memory_space<vmem>>, vector<1x2x16xbf16>
    %152 = vector.shape_cast %151 : vector<1x2x16xbf16> to vector<2x16xbf16>
    %cst_134 = arith.constant dense<0.000000e+00> : vector<2x96xf32>
    %153 = tpu.matmul %152, %150, %cst_134 {dimension_numbers = #tpu.dot_dimension_numbers<[1], [0], [0], [1], [0, 0, 1, 1], [], []>} : vector<2x16xbf16>, vector<16x96xbf16>, vector<2x96xf32> -> vector<2x96xf32>
    %154 = arith.truncf %153 : vector<2x96xf32> to vector<2x96xbf16>
    %c0_135 = arith.constant 0 : index
    %c0_136 = arith.constant 0 : index
    %c0_137 = arith.constant 0 : index
    %155 = vector.load %arg12[%c0_135, %c0_136, %c0_137] : memref<8x96x10xbf16, #tpu.memory_space<vmem>>, vector<1x96x10xbf16>
    %156 = vector.shape_cast %155 : vector<1x96x10xbf16> to vector<96x10xbf16>
    %cst_138 = arith.constant dense<0.000000e+00> : vector<2x10xf32>
    %157 = tpu.matmul %154, %156, %cst_138 {dimension_numbers = #tpu.dot_dimension_numbers<[1], [0], [0], [1], [0, 0, 1, 1], [], []>} : vector<2x96xbf16>, vector<96x10xbf16>, vector<2x10xf32> -> vector<2x10xf32>
    %c1_139 = arith.constant 1 : index
    %c0_140 = arith.constant 0 : index
    %c0_141 = arith.constant 0 : index
    %158 = vector.load %arg11[%c1_139, %c0_140, %c0_141] : memref<8x2x16xbf16, #tpu.memory_space<vmem>>, vector<1x2x16xbf16>
    %159 = vector.shape_cast %158 : vector<1x2x16xbf16> to vector<2x16xbf16>
    %cst_142 = arith.constant dense<0.000000e+00> : vector<2x96xf32>
    %160 = tpu.matmul %159, %150, %cst_142 {dimension_numbers = #tpu.dot_dimension_numbers<[1], [0], [0], [1], [0, 0, 1, 1], [], []>} : vector<2x16xbf16>, vector<16x96xbf16>, vector<2x96xf32> -> vector<2x96xf32>
    %161 = arith.truncf %160 : vector<2x96xf32> to vector<2x96xbf16>
    %c1_143 = arith.constant 1 : index
    %c0_144 = arith.constant 0 : index
    %c0_145 = arith.constant 0 : index
    %162 = vector.load %arg12[%c1_143, %c0_144, %c0_145] : memref<8x96x10xbf16, #tpu.memory_space<vmem>>, vector<1x96x10xbf16>
    %163 = vector.shape_cast %162 : vector<1x96x10xbf16> to vector<96x10xbf16>
    %cst_146 = arith.constant dense<0.000000e+00> : vector<2x10xf32>
    %164 = tpu.matmul %161, %163, %cst_146 {dimension_numbers = #tpu.dot_dimension_numbers<[1], [0], [0], [1], [0, 0, 1, 1], [], []>} : vector<2x96xbf16>, vector<96x10xbf16>, vector<2x10xf32> -> vector<2x10xf32>
    %165 = arith.addf %157, %164 : vector<2x10xf32>
    %c2_147 = arith.constant 2 : index
    %c0_148 = arith.constant 0 : index
    %c0_149 = arith.constant 0 : index
    %166 = vector.load %arg11[%c2_147, %c0_148, %c0_149] : memref<8x2x16xbf16, #tpu.memory_space<vmem>>, vector<1x2x16xbf16>
    %167 = vector.shape_cast %166 : vector<1x2x16xbf16> to vector<2x16xbf16>
    %cst_150 = arith.constant dense<0.000000e+00> : vector<2x96xf32>
    %168 = tpu.matmul %167, %150, %cst_150 {dimension_numbers = #tpu.dot_dimension_numbers<[1], [0], [0], [1], [0, 0, 1, 1], [], []>} : vector<2x16xbf16>, vector<16x96xbf16>, vector<2x96xf32> -> vector<2x96xf32>
    %169 = arith.truncf %168 : vector<2x96xf32> to vector<2x96xbf16>
    %c2_151 = arith.constant 2 : index
    %c0_152 = arith.constant 0 : index
    %c0_153 = arith.constant 0 : index
    %170 = vector.load %arg12[%c2_151, %c0_152, %c0_153] : memref<8x96x10xbf16, #tpu.memory_space<vmem>>, vector<1x96x10xbf16>
    %171 = vector.shape_cast %170 : vector<1x96x10xbf16> to vector<96x10xbf16>
    %cst_154 = arith.constant dense<0.000000e+00> : vector<2x10xf32>
    %172 = tpu.matmul %169, %171, %cst_154 {dimension_numbers = #tpu.dot_dimension_numbers<[1], [0], [0], [1], [0, 0, 1, 1], [], []>} : vector<2x96xbf16>, vector<96x10xbf16>, vector<2x10xf32> -> vector<2x10xf32>
    %173 = arith.addf %165, %172 : vector<2x10xf32>
    %c3_155 = arith.constant 3 : index
    %c0_156 = arith.constant 0 : index
    %c0_157 = arith.constant 0 : index
    %174 = vector.load %arg11[%c3_155, %c0_156, %c0_157] : memref<8x2x16xbf16, #tpu.memory_space<vmem>>, vector<1x2x16xbf16>
    %175 = vector.shape_cast %174 : vector<1x2x16xbf16> to vector<2x16xbf16>
    %cst_158 = arith.constant dense<0.000000e+00> : vector<2x96xf32>
    %176 = tpu.matmul %175, %150, %cst_158 {dimension_numbers = #tpu.dot_dimension_numbers<[1], [0], [0], [1], [0, 0, 1, 1], [], []>} : vector<2x16xbf16>, vector<16x96xbf16>, vector<2x96xf32> -> vector<2x96xf32>
    %177 = arith.truncf %176 : vector<2x96xf32> to vector<2x96xbf16>
    %c3_159 = arith.constant 3 : index
    %c0_160 = arith.constant 0 : index
    %c0_161 = arith.constant 0 : index
    %178 = vector.load %arg12[%c3_159, %c0_160, %c0_161] : memref<8x96x10xbf16, #tpu.memory_space<vmem>>, vector<1x96x10xbf16>
    %179 = vector.shape_cast %178 : vector<1x96x10xbf16> to vector<96x10xbf16>
    %cst_162 = arith.constant dense<0.000000e+00> : vector<2x10xf32>
    %180 = tpu.matmul %177, %179, %cst_162 {dimension_numbers = #tpu.dot_dimension_numbers<[1], [0], [0], [1], [0, 0, 1, 1], [], []>} : vector<2x96xbf16>, vector<96x10xbf16>, vector<2x10xf32> -> vector<2x10xf32>
    %181 = arith.addf %173, %180 : vector<2x10xf32>
    %c4_163 = arith.constant 4 : index
    %c0_164 = arith.constant 0 : index
    %c0_165 = arith.constant 0 : index
    %182 = vector.load %arg11[%c4_163, %c0_164, %c0_165] : memref<8x2x16xbf16, #tpu.memory_space<vmem>>, vector<1x2x16xbf16>
    %183 = vector.shape_cast %182 : vector<1x2x16xbf16> to vector<2x16xbf16>
    %cst_166 = arith.constant dense<0.000000e+00> : vector<2x96xf32>
    %184 = tpu.matmul %183, %150, %cst_166 {dimension_numbers = #tpu.dot_dimension_numbers<[1], [0], [0], [1], [0, 0, 1, 1], [], []>} : vector<2x16xbf16>, vector<16x96xbf16>, vector<2x96xf32> -> vector<2x96xf32>
    %185 = arith.truncf %184 : vector<2x96xf32> to vector<2x96xbf16>
    %c4_167 = arith.constant 4 : index
    %c0_168 = arith.constant 0 : index
    %c0_169 = arith.constant 0 : index
    %186 = vector.load %arg12[%c4_167, %c0_168, %c0_169] : memref<8x96x10xbf16, #tpu.memory_space<vmem>>, vector<1x96x10xbf16>
    %187 = vector.shape_cast %186 : vector<1x96x10xbf16> to vector<96x10xbf16>
    %cst_170 = arith.constant dense<0.000000e+00> : vector<2x10xf32>
    %188 = tpu.matmul %185, %187, %cst_170 {dimension_numbers = #tpu.dot_dimension_numbers<[1], [0], [0], [1], [0, 0, 1, 1], [], []>} : vector<2x96xbf16>, vector<96x10xbf16>, vector<2x10xf32> -> vector<2x10xf32>
    %189 = arith.addf %181, %188 : vector<2x10xf32>
    %c5 = arith.constant 5 : index
    %c0_171 = arith.constant 0 : index
    %c0_172 = arith.constant 0 : index
    %190 = vector.load %arg11[%c5, %c0_171, %c0_172] : memref<8x2x16xbf16, #tpu.memory_space<vmem>>, vector<1x2x16xbf16>
    %191 = vector.shape_cast %190 : vector<1x2x16xbf16> to vector<2x16xbf16>
    %cst_173 = arith.constant dense<0.000000e+00> : vector<2x96xf32>
    %192 = tpu.matmul %191, %150, %cst_173 {dimension_numbers = #tpu.dot_dimension_numbers<[1], [0], [0], [1], [0, 0, 1, 1], [], []>} : vector<2x16xbf16>, vector<16x96xbf16>, vector<2x96xf32> -> vector<2x96xf32>
    %193 = arith.truncf %192 : vector<2x96xf32> to vector<2x96xbf16>
    %c5_174 = arith.constant 5 : index
    %c0_175 = arith.constant 0 : index
    %c0_176 = arith.constant 0 : index
    %194 = vector.load %arg12[%c5_174, %c0_175, %c0_176] : memref<8x96x10xbf16, #tpu.memory_space<vmem>>, vector<1x96x10xbf16>
    %195 = vector.shape_cast %194 : vector<1x96x10xbf16> to vector<96x10xbf16>
    %cst_177 = arith.constant dense<0.000000e+00> : vector<2x10xf32>
    %196 = tpu.matmul %193, %195, %cst_177 {dimension_numbers = #tpu.dot_dimension_numbers<[1], [0], [0], [1], [0, 0, 1, 1], [], []>} : vector<2x96xbf16>, vector<96x10xbf16>, vector<2x10xf32> -> vector<2x10xf32>
    %197 = arith.addf %189, %196 : vector<2x10xf32>
    %c6 = arith.constant 6 : index
    %c0_178 = arith.constant 0 : index
    %c0_179 = arith.constant 0 : index
    %198 = vector.load %arg11[%c6, %c0_178, %c0_179] : memref<8x2x16xbf16, #tpu.memory_space<vmem>>, vector<1x2x16xbf16>
    %199 = vector.shape_cast %198 : vector<1x2x16xbf16> to vector<2x16xbf16>
    %cst_180 = arith.constant dense<0.000000e+00> : vector<2x96xf32>
    %200 = tpu.matmul %199, %150, %cst_180 {dimension_numbers = #tpu.dot_dimension_numbers<[1], [0], [0], [1], [0, 0, 1, 1], [], []>} : vector<2x16xbf16>, vector<16x96xbf16>, vector<2x96xf32> -> vector<2x96xf32>
    %201 = arith.truncf %200 : vector<2x96xf32> to vector<2x96xbf16>
    %c6_181 = arith.constant 6 : index
    %c0_182 = arith.constant 0 : index
    %c0_183 = arith.constant 0 : index
    %202 = vector.load %arg12[%c6_181, %c0_182, %c0_183] : memref<8x96x10xbf16, #tpu.memory_space<vmem>>, vector<1x96x10xbf16>
    %203 = vector.shape_cast %202 : vector<1x96x10xbf16> to vector<96x10xbf16>
    %cst_184 = arith.constant dense<0.000000e+00> : vector<2x10xf32>
    %204 = tpu.matmul %201, %203, %cst_184 {dimension_numbers = #tpu.dot_dimension_numbers<[1], [0], [0], [1], [0, 0, 1, 1], [], []>} : vector<2x96xbf16>, vector<96x10xbf16>, vector<2x10xf32> -> vector<2x10xf32>
    %205 = arith.addf %197, %204 : vector<2x10xf32>
    %c7 = arith.constant 7 : index
    %c0_185 = arith.constant 0 : index
    %c0_186 = arith.constant 0 : index
    %206 = vector.load %arg11[%c7, %c0_185, %c0_186] : memref<8x2x16xbf16, #tpu.memory_space<vmem>>, vector<1x2x16xbf16>
    %207 = vector.shape_cast %206 : vector<1x2x16xbf16> to vector<2x16xbf16>
    %cst_187 = arith.constant dense<0.000000e+00> : vector<2x96xf32>
    %208 = tpu.matmul %207, %150, %cst_187 {dimension_numbers = #tpu.dot_dimension_numbers<[1], [0], [0], [1], [0, 0, 1, 1], [], []>} : vector<2x16xbf16>, vector<16x96xbf16>, vector<2x96xf32> -> vector<2x96xf32>
    %209 = arith.truncf %208 : vector<2x96xf32> to vector<2x96xbf16>
    %c7_188 = arith.constant 7 : index
    %c0_189 = arith.constant 0 : index
    %c0_190 = arith.constant 0 : index
    %210 = vector.load %arg12[%c7_188, %c0_189, %c0_190] : memref<8x96x10xbf16, #tpu.memory_space<vmem>>, vector<1x96x10xbf16>
    %211 = vector.shape_cast %210 : vector<1x96x10xbf16> to vector<96x10xbf16>
    %cst_191 = arith.constant dense<0.000000e+00> : vector<2x10xf32>
    %212 = tpu.matmul %209, %211, %cst_191 {dimension_numbers = #tpu.dot_dimension_numbers<[1], [0], [0], [1], [0, 0, 1, 1], [], []>} : vector<2x96xbf16>, vector<96x10xbf16>, vector<2x10xf32> -> vector<2x10xf32>
    %213 = arith.addf %205, %212 : vector<2x10xf32>
    %c0_192 = arith.constant 0 : index
    %c0_193 = arith.constant 0 : index
    %214 = vector.load %arg13[%c0_192, %c0_193] : memref<1x10xf32, #tpu.memory_space<vmem>>, vector<1x10xf32>
    %215 = vector.broadcast %214 : vector<1x10xf32> to vector<2x10xf32>
    %216 = arith.addf %213, %215 : vector<2x10xf32>
    %c0_194 = arith.constant 0 : index
    %c0_195 = arith.constant 0 : index
    %217 = vector.load %arg14[%c0_194, %c0_195] : memref<2x10xf32, #tpu.memory_space<vmem>>, vector<2x10xf32>
    tpu.vector_store %arg14[%c0_194, %c0_195], %216 {strides = array<i32>} : memref<2x10xf32, #tpu.memory_space<vmem>>, vector<2x10xf32>,
    return
  }
  func.func @transform_0(%arg0: i32) -> (i32, i32) {
    %c0_i32 = arith.constant 0 : i32
    %c0_i32_0 = arith.constant 0 : i32
    %c0_i32_1 = arith.constant 0 : i32
    return %c0_i32, %c0_i32_0 : i32, i32
  }
  func.func @transform_1(%arg0: i32) -> (i32, i32, i32) {
    %c0_i32 = arith.constant 0 : i32
    %c0_i32_0 = arith.constant 0 : i32
    %c0_i32_1 = arith.constant 0 : i32
    %c0_i32_2 = arith.constant 0 : i32
    return %c0_i32, %c0_i32_0, %c0_i32_1 : i32, i32, i32
  }
  func.func @transform_2(%arg0: i32) -> (i32, i32, i32) {
    %c0_i32 = arith.constant 0 : i32
    %c0_i32_0 = arith.constant 0 : i32
    %c0_i32_1 = arith.constant 0 : i32
    %c0_i32_2 = arith.constant 0 : i32
    return %c0_i32, %c0_i32_0, %c0_i32_1 : i32, i32, i32
  }
  func.func @transform_3(%arg0: i32) -> (i32, i32) {
    %c0_i32 = arith.constant 0 : i32
    %c0_i32_0 = arith.constant 0 : i32
    %c0_i32_1 = arith.constant 0 : i32
    return %c0_i32, %c0_i32_0 : i32, i32
  }
  func.func @transform_4(%arg0: i32) -> (i32, i32, i32) {
    %c0_i32 = arith.constant 0 : i32
    %c0_i32_0 = arith.constant 0 : i32
    %c0_i32_1 = arith.constant 0 : i32
    %c0_i32_2 = arith.constant 0 : i32
    return %c0_i32, %c0_i32_0, %c0_i32_1 : i32, i32, i32
  }
  func.func @transform_5(%arg0: i32) -> (i32, i32, i32) {
    %c0_i32 = arith.constant 0 : i32
    %c0_i32_0 = arith.constant 0 : i32
    %c0_i32_1 = arith.constant 0 : i32
    %c0_i32_2 = arith.constant 0 : i32
    return %c0_i32, %c0_i32_0, %c0_i32_1 : i32, i32, i32
  }
  func.func @transform_6(%arg0: i32) -> (i32, i32) {
    %c0_i32 = arith.constant 0 : i32
    %c0_i32_0 = arith.constant 0 : i32
    %c0_i32_1 = arith.constant 0 : i32
    return %c0_i32, %c0_i32_0 : i32, i32
  }
  func.func @transform_7(%arg0: i32) -> (i32, i32, i32) {
    %c0_i32 = arith.constant 0 : i32
    %c0_i32_0 = arith.constant 0 : i32
    %c0_i32_1 = arith.constant 0 : i32
    %c0_i32_2 = arith.constant 0 : i32
    return %c0_i32, %c0_i32_0, %c0_i32_1 : i32, i32, i32
  }
  func.func @transform_8(%arg0: i32) -> (i32, i32, i32) {
    %c0_i32 = arith.constant 0 : i32
    %c0_i32_0 = arith.constant 0 : i32
    %c0_i32_1 = arith.constant 0 : i32
    %c0_i32_2 = arith.constant 0 : i32
    return %c0_i32, %c0_i32_0, %c0_i32_1 : i32, i32, i32
  }
  func.func @transform_9(%arg0: i32) -> (i32, i32) {
    %c0_i32 = arith.constant 0 : i32
    %c0_i32_0 = arith.constant 0 : i32
    %c0_i32_1 = arith.constant 0 : i32
    return %c0_i32, %c0_i32_0 : i32, i32
  }
  func.func @transform_10(%arg0: i32) -> (i32, i32, i32) {
    %c0_i32 = arith.constant 0 : i32
    %c0_i32_0 = arith.constant 0 : i32
    %c0_i32_1 = arith.constant 0 : i32
    %c0_i32_2 = arith.constant 0 : i32
    return %c0_i32, %c0_i32_0, %c0_i32_1 : i32, i32, i32
  }
  func.func @transform_11(%arg0: i32) -> (i32, i32, i32) {
    %c0_i32 = arith.constant 0 : i32
    %c0_i32_0 = arith.constant 0 : i32
    %c0_i32_1 = arith.constant 0 : i32
    %c0_i32_2 = arith.constant 0 : i32
    return %c0_i32, %c0_i32_0, %c0_i32_1 : i32, i32, i32
  }
  func.func @transform_12(%arg0: i32) -> (i32, i32) {
    %c0_i32 = arith.constant 0 : i32
    %c0_i32_0 = arith.constant 0 : i32
    %c0_i32_1 = arith.constant 0 : i32
    return %c0_i32, %c0_i32_0 : i32, i32
  }
  func.func @transform_13(%arg0: i32) -> (i32, i32) {
    %c0_i32 = arith.constant 0 : i32
    %c0_i32_0 = arith.constant 0 : i32
    %c0_i32_1 = arith.constant 0 : i32
    return %c0_i32, %c0_i32_0 : i32, i32
  }
}

</mosaic_0001>

<bundles_post_ra>
// kernel: lenet_forward.1
= control target key start
LH: loop header
LB: loop body
LE: loop exit
PB: predicated region body
PF: predicated region fallthrough
CT: control target
= control target key end

     0   :  { %18 = vsyncpa [#allocation3], 0  ;;  %s6683_s0 = inlined_call_operand.vmem [shape: bf16[64,96], index: 0, kind: input, shape index: {}]   ;;  %s6684_s1 = inlined_call_operand.vmem [shape: bf16[5,32,64], index: 1, kind: input, shape index: {}]   ;;  %s6685_s2 = inlined_call_operand.vmem [shape: bf16[5,96,192], index: 2, kind: input, shape index: {}]   ;;  %s6686_s3 = inlined_call_operand.hbm [shape: f32[1,192], index: 3, kind: input, shape index: {}]   ;;  %s6687_s4 = inlined_call_operand.vmem [shape: bf16[5,16,32], index: 4, kind: input, shape index: {}]   ;;  %s6688_s5 = inlined_call_operand.vmem [shape: bf16[5,192,96], index: 5, kind: input, shape index: {}]   ;;  %s6689_s6 = inlined_call_operand.vmem [shape: f32[1,96], index: 6, kind: input, shape index: {}]   ;;  %s6690_s7 = inlined_call_operand.hbm [shape: bf16[5,16,16], index: 7, kind: input, shape index: {}]   ;;  %s6691_s8 = inlined_call_operand.hbm [shape: bf16[5,96,96], index: 8, kind: input, shape index: {}]   ;;  %s6692_s9 = inlined_call_operand.vmem [shape: f32[1,96], index: 9, kind: input, shape index: {}]   ;;  %s6693_s10 = inlined_call_operand.vmem [shape: bf16[8,2,16], index: 10, kind: input, shape index: {}]   ;;  %s6694_s11 = inlined_call_operand.vmem [shape: bf16[8,96,10], index: 11, kind: input, shape index: {}]   ;;  %s6695_s12 = inlined_call_operand.vmem [shape: f32[1,10], index: 12, kind: input, shape index: {}]   ;;  %s6696_s13 = inlined_call_operand.hbm [shape: f32[2,10], index: 13, kind: output, shape index: {}]  }
   0x1   :  { %19 = vsyncpa [#allocation6], 0 }
   0x2   :  { %20 = vsyncpa [#allocation4], 0  ;;  %s5556_s25 = smov [#allocation5]   ;;  %s5462_s29 = scalar_lea.hbm %s6690_s7, 640 }
   0x3   :  { %s48_s26 = sshll.u32 %s5556_s25, 4  ;;  %p5463_p0 = scmp.ne.s32.totalorder %s6690_s7, %s5462_s29  ;;  %s49_s26 = int_to_ptr.vmem [resolvable:$true] %s48_s26 }
   0x4   :  { %p5466_p1 = scmp.lt.u32.totalorder %s5462_s29, %s6690_s7 }
   0x6   :  { %p5468_p2 = pnand %p5466_p1, %p5463_p0 }
   0x8   :  { %5471 = shalt.err (!%p5468_p2)
}
   0x9   :  { %s5472_s17 = scalar_lea.vmem %s49_s26, 640  ;;  %p5477_p4 = scmp.lt.s32.totalorder %s49_s26, %s49_s26 }
   0xa   :  { %p5473_p3 = scmp.ne.s32.totalorder %s49_s26, %s5472_s17  ;;  %p5478_p5 = scmp.lt.s32.totalorder %s5472_s17, %s5472_s17 }
   0xc   :  { %p5479_p6 = por %p5478_p5, %p5477_p4 }
   0xe   :  { %p5480_p7 = pnand %p5479_p6, %p5473_p3 }
  0x10   :  { %5483 = shalt.err (!%p5480_p7)
}
  0x11   :  { %s5557_s18 = smov 64   ;;  %s5558_s19 = smov 4  }
  0x12   :  { %54 = dma.hbm_to_vmem [thread:$0]  %s6690_s7, 640, %s49_s26, [#allocation6], %s5557_s18, %s5557_s18, %s5558_s19  }
  0x13   :  { %s5559_s22 = smov [#allocation2]   ;;  %s5560_s24 = smov [#allocation7]  }
  0x14   :  { %s33_s23 = sshll.u32 %s5559_s22, 4  ;;  %s60_s25 = sshll.u32 %s5560_s24, 4  ;;  %s34_s23 = int_to_ptr.vmem [resolvable:$true] %s33_s23  ;;  %s61_s25 = int_to_ptr.vmem [resolvable:$true] %s60_s25 }
  0x15   :  { %s5484_s29 = scalar_lea.hbm %s6686_s3, 32 }
  0x16   :  { %p5485_p8 = scmp.ne.s32.totalorder %s6686_s3, %s5484_s29  ;;  %p5488_p9 = scmp.lt.u32.totalorder %s5484_s29, %s6686_s3 }
  0x18   :  { %p5490_p10 = pnand %p5488_p9, %p5485_p8 }
  0x1a   :  { %5493 = shalt.err (!%p5490_p10)
}
  0x1b   :  { %s5494_s7 = scalar_lea.vmem %s34_s23, 32  ;;  %p5499_p12 = scmp.lt.s32.totalorder %s34_s23, %s34_s23 }
  0x1c   :  { %p5495_p11 = scmp.ne.s32.totalorder %s34_s23, %s5494_s7  ;;  %p5500_p13 = scmp.lt.s32.totalorder %s5494_s7, %s5494_s7 }
  0x1e   :  { %p5501_p0 = por %p5500_p13, %p5499_p12 }
  0x20   :  { %p5502_p1 = pnand %p5501_p0, %p5495_p11 }
  0x22   :  { %5505 = shalt.err (!%p5502_p1)
}
  0x23   :  { %36 = dma.hbm_to_vmem [thread:$0]  %s6686_s3, 32, %s34_s23, [#allocation3]  }
  0x24   :  { %s5506_s22 = scalar_lea.hbm %s6691_s8, 3840 }
  0x25   :  { %p5507_p2 = scmp.ne.s32.totalorder %s6691_s8, %s5506_s22  ;;  %p5510_p3 = scmp.lt.u32.totalorder %s5506_s22, %s6691_s8 }
  0x27   :  { %p5512_p4 = pnand %p5510_p3, %p5507_p2 }
  0x29   :  { %5515 = shalt.err (!%p5512_p4)
}
  0x2a   :  { %s5516_s30 = scalar_lea.vmem %s61_s25, 3840  ;;  %p5521_p6 = scmp.lt.s32.totalorder %s61_s25, %s61_s25 }
  0x2b   :  { %p5517_p5 = scmp.ne.s32.totalorder %s61_s25, %s5516_s30  ;;  %p5522_p7 = scmp.lt.s32.totalorder %s5516_s30, %s5516_s30 }
  0x2d   :  { %p5523_p8 = por %p5522_p7, %p5521_p6 }
  0x2f   :  { %p5524_p9 = pnand %p5523_p8, %p5517_p5 }
  0x31   :  { %5527 = shalt.err (!%p5524_p9)
}
  0x32   :  { %66 = dma.hbm_to_vmem [thread:$0]  %s6691_s8, 3840, %s61_s25, [#allocation6], %s5557_s18, %s5557_s18, %s5558_s19  }
  0x33   :  { %5550 = dma.done.wait [#allocation3], 32  }
  0x34   :  { %5551 = vsyncadd [#allocation3], 4294967264 }
  0x35   :  { %5552 = dma.done.wait [#allocation6], 4480  }
  0x36   :  { %5553 = vsyncadd [#allocation6], 4294962816  ;;  %v5680_v0 = vld [vmem:[%s6683_s0] sm:$0xff]   ;;  %v5685_v1 = vld [vmem:[%s6683_s0 + $0x8] sm:$0xff]   ;;  %vm131_vm0 = vcmask 523264   ;;  %v5561_v27 = vmov 0  }
  0x37   :  { %4811 = vmatprep.subr.bf16.mxu1 %v5680_v0  ;;  %4799 = vmatprep.subr.bf16.mxu0 %v5680_v0  ;;  %v5693_v2 = vld [vmem:[%s6683_s0 + $0x10] sm:$0xff]   ;;  %v5192_v4 = vld [vmem:[%s6684_s1] sm:$0xff]   ;;  %v5711_v5 = vld [vmem:[%s6683_s0 + $0x18] sm:$0xff]   ;;  %vm346_vm1 = vcmask 785408   ;;  %vm1224_vm2 = vcmask 261120   ;;  %vm5563_vm3 = vmmov 0  }
  0x38   :  { %4812 = vmatpush3.bf16.msra.mxu1 %v5680_v0  ;;  %4800 = vmatpush3.bf16.msra.mxu0 %v5680_v0  ;;  %v5190_v3 = vld [vmem:[%s6684_s1 + $0x10] sm:$0xff]   ;;  %v5191_v6 = vld [vmem:[%s6684_s1 + $0x18] sm:$0xff]   ;;  %v5193_v7 = vld [vmem:[%s6684_s1 + $0x8] sm:$0xff]   ;;  %vm2232_vm4 = vcmask 130048   ;;  %vm4094_vm5 = vcmask 74752  }
  0x39   :  { %4813 = vmatprep.subr.bf16.mxu1 %v5685_v1  ;;  %4801 = vmatprep.subr.bf16.mxu0 %v5685_v1  ;;  %v5194_v8 = vld [vmem:[%s6684_s1 + $0x20] sm:$0xff]   ;;  %v5205_v11 = vld [vmem:[%s6685_s2 + $0x74] ss:$8 sps:$4 sm:$0xff]   ;;  %v5203_v12 = vld [vmem:[%s6685_s2 + $0x70] ss:$8 sps:$4 sm:$0xff]  }
  0x3a   :  { %4819 = vmatprep.mubr.msk.bf16.mxu1 %vm131_vm0, %v5190_v3  ;;  %4807 = vmatprep.mubr.msk.bf16.mxu0 %vm131_vm0, %v5192_v4  ;;  %v5202_v9 = vld [vmem:[%s6685_s2 + $0x64] ss:$8 sps:$4 sm:$0xff]   ;;  %v5200_v10 = vld [vmem:[%s6685_s2 + $0x60] ss:$8 sps:$4 sm:$0xff]   ;;  %v5211_v15 = vld [vmem:[%s6685_s2 + $0x94] ss:$8 sps:$4 sm:$0xff]  }
  0x3b   :  { %v5208_v13 = vld [vmem:[%s6685_s2 + $0x84] ss:$8 sps:$4 sm:$0xff]   ;;  %v5206_v14 = vld [vmem:[%s6685_s2 + $0x80] ss:$8 sps:$4 sm:$0xff]   ;;  %v5209_v16 = vld [vmem:[%s6685_s2 + $0x90] ss:$8 sps:$4 sm:$0xff]  }
  0x3c   :  { %4814 = vmatpush3.bf16.msra.mxu1 %v5685_v1  ;;  %4802 = vmatpush3.bf16.msra.mxu0 %v5685_v1  ;;  %v5214_v17 = vld [vmem:[%s6685_s2 + $0xa4] ss:$8 sps:$4 sm:$0xff]   ;;  %v5196_v19 = vld [vmem:[%s6684_s1 + $0x30] sm:$0xff]   ;;  %v5212_v20 = vld [vmem:[%s6685_s2 + $0xa0] ss:$8 sps:$4 sm:$0xff]  }
  0x3d   :  { %4815 = vmatprep.subr.bf16.mxu1 %v5693_v2  ;;  %4803 = vmatprep.subr.bf16.mxu0 %v5693_v2  ;;  %v5195_v18 = vld [vmem:[%s6684_s1 + $0x28] sm:$0xff]   ;;  %v5197_v21 = vld [vmem:[%s6684_s1 + $0x38] sm:$0xff]   ;;  %v5198_v22 = vld [vmem:[%s6684_s1 + $0x40] sm:$0xff]  }
  0x3e   :  { %v5199_v23 = vld [vmem:[%s6684_s1 + $0x48] sm:$0xff]   ;;  %v5217_v24 = vld [vmem:[%s6685_s2 + $0xb4] ss:$8 sps:$4 sm:$0xff]   ;;  %v5215_v25 = vld [vmem:[%s6685_s2 + $0xb0] ss:$8 sps:$4 sm:$0xff]  }
  0x3f   :  { %v5220_v26 = vld [vmem:[%s6685_s2 + $0x4] ss:$8 sps:$4 sm:$0xff]   ;;  %v5218_v36 = vld [vmem:[%s6685_s2] ss:$8 sps:$4 sm:$0xff]   ;;  %v5223_v40 = vld [vmem:[%s6685_s2 + $0x14] ss:$8 sps:$4 sm:$0xff]  }
  0x40   :  { %4816 = vmatpush3.bf16.msra.mxu1 %v5693_v2  ;;  %4804 = vmatpush3.bf16.msra.mxu0 %v5693_v2  ;;  %v5221_v42 = vld [vmem:[%s6685_s2 + $0x10] ss:$8 sps:$4 sm:$0xff]   ;;  %v5226_v43 = vld [vmem:[%s6685_s2 + $0x24] ss:$8 sps:$4 sm:$0xff]   ;;  %v5224_v44 = vld [vmem:[%s6685_s2 + $0x20] ss:$8 sps:$4 sm:$0xff]  }
  0x41   :  { %4817 = vmatprep.subr.bf16.mxu1 %v5711_v5  ;;  %4805 = vmatprep.subr.bf16.mxu0 %v5711_v5  ;;  %v5229_v45 = vld [vmem:[%s6685_s2 + $0x34] ss:$8 sps:$4 sm:$0xff]   ;;  %v5227_v46 = vld [vmem:[%s6685_s2 + $0x30] ss:$8 sps:$4 sm:$0xff]   ;;  %v5232_v47 = vld [vmem:[%s6685_s2 + $0x44] ss:$8 sps:$4 sm:$0xff]  }
  0x42   :  { %v5230_v51 = vld [vmem:[%s6685_s2 + $0x40] ss:$8 sps:$4 sm:$0xff]   ;;  %v5235_v54 = vld [vmem:[%s6685_s2 + $0x54] ss:$8 sps:$4 sm:$0xff]   ;;  %v5233_v56 = vld [vmem:[%s6685_s2 + $0x50] ss:$8 sps:$4 sm:$0xff]  }
  0x43   :  { %v5238_v57 = vld [vmem:[%s6685_s2 + $0xc4] ss:$8 sps:$4 sm:$0xff]   ;;  %v5236_v58 = vld [vmem:[%s6685_s2 + $0xc0] ss:$8 sps:$4 sm:$0xff]   ;;  %v5241_v59 = vld [vmem:[%s6685_s2 + $0xd4] ss:$8 sps:$4 sm:$0xff]  }
  0x44   :  { %4818 = vmatpush3.bf16.msra.mxu1 %v5711_v5  ;;  %4806 = vmatpush3.bf16.msra.mxu0 %v5711_v5  ;;  %v5239_v60 = vld [vmem:[%s6685_s2 + $0xd0] ss:$8 sps:$4 sm:$0xff]   ;;  %v5244_v61 = vld [vmem:[%s6685_s2 + $0xe4] ss:$8 sps:$4 sm:$0xff]   ;;  %v5247_v4 = vld [vmem:[%s6685_s2 + $0xf4] ss:$8 sps:$4 sm:$0xff]  }
  0x45   :  { %4823 = vmatprep.subr.bf16.mxu1 %v5680_v0  ;;  %353 = vmatprep.subr.bf16.mxu0 %v5202_v9  ;;  %v5253_v9 = vld [vmem:[%s6685_s2 + $0x114] ss:$8 sps:$4 sm:$0xff]  }
  0x47   :  { %4820 = vmatmul.mubr.msk.bf16.vlgmr.msra.gmra.mrb[0].mxu1 %vm131_vm0, %v5191_v6  ;;  %4808 = vmatmul.mubr.msk.bf16.vlgmr.msra.gmra.mrb[0].mxu0 %vm131_vm0, %v5193_v7  ;;  %v5245_v6 = vld [vmem:[%s6685_s2 + $0xf0] ss:$8 sps:$4 sm:$0xff]   ;;  %v5250_v7 = vld [vmem:[%s6685_s2 + $0x104] ss:$8 sps:$4 sm:$0xff]  }
  0x48   :  { %4824 = vmatpush3.bf16.msra.mxu1 %v5680_v0  ;;  %4831 = vmatprep.mubr.msk.bf16.mxu1 %vm131_vm0, %v5194_v8  ;;  %v5248_v8 = vld [vmem:[%s6685_s2 + $0x100] ss:$8 sps:$4 sm:$0xff]  }
  0x49   :  { %4825 = vmatprep.subr.bf16.mxu1 %v5685_v1  ;;  %354 = vmatpush1.bf16.msra.mxu0 %v5200_v10  ;;  %v5251_v10 = vld [vmem:[%s6685_s2 + $0x110] ss:$8 sps:$4 sm:$0xff]  }
  0x4a   :  { %355 = vmatprep.subr.bf16.mxu0 %v5205_v11  ;;  %385 = vmatprep.mubr.bf16.mxu0 %v5561_v27  ;;  %v5256_v11 = vld [vmem:[%s6685_s2 + $0x124] ss:$8 sps:$4 sm:$0xff]  }
  0x4c   :  { %4826 = vmatpush3.bf16.msra.mxu1 %v5685_v1 }
  0x4d   :  { %4827 = vmatprep.subr.bf16.mxu1 %v5693_v2  ;;  %356 = vmatpush1.bf16.msra.mxu0 %v5203_v12 }
  0x4e   :  { %357 = vmatprep.subr.bf16.mxu0 %v5208_v13 }
  0x50   :  { %4828 = vmatpush3.bf16.msra.mxu1 %v5693_v2 }
  0x51   :  { %4829 = vmatprep.subr.bf16.mxu1 %v5711_v5  ;;  %358 = vmatpush1.bf16.msra.mxu0 %v5206_v14 }
  0x52   :  { %359 = vmatprep.subr.bf16.mxu0 %v5211_v15  ;;  %v5254_v15 = vld [vmem:[%s6685_s2 + $0x120] ss:$8 sps:$4 sm:$0xff]  }
  0x54   :  { %4830 = vmatpush3.bf16.msra.mxu1 %v5711_v5 }
  0x55   :  { %4835 = vmatprep.subr.bf16.mxu1 %v5680_v0  ;;  %360 = vmatpush1.bf16.msra.mxu0 %v5209_v16 }
  0x56   :  { %361 = vmatprep.subr.bf16.mxu0 %v5214_v17 }
  0x57   :  { %4832 = vmatmul.mubr.msk.bf16.vlgmr.msra.gmra.mrb[4].mxu1 %vm131_vm0, %v5195_v18  ;;  %v5259_v18 = vld [vmem:[%s6685_s2 + $0x134] ss:$8 sps:$4 sm:$0xff]  }
  0x58   :  { %4836 = vmatpush3.bf16.msra.mxu1 %v5680_v0  ;;  %4843 = vmatprep.mubr.msk.bf16.mxu1 %vm131_vm0, %v5196_v19 }
  0x59   :  { %4837 = vmatprep.subr.bf16.mxu1 %v5685_v1  ;;  %362 = vmatpush1.bf16.msra.mxu0 %v5212_v20  ;;  %v5257_v20 = vld [vmem:[%s6685_s2 + $0x130] ss:$8 sps:$4 sm:$0xff]  }
  0x5a   :  { %363 = vmatprep.subr.bf16.mxu0 %v5217_v24  ;;  %v5263_v24 = vld [vmem:[%s6685_s2 + $0x150] ss:$8 sps:$4 sm:$0xff]  }
  0x5c   :  { %4838 = vmatpush3.bf16.msra.mxu1 %v5685_v1 }
  0x5d   :  { %4839 = vmatprep.subr.bf16.mxu1 %v5693_v2  ;;  %364 = vmatpush1.bf16.msra.mxu0 %v5215_v25  ;;  %v5268_v25 = vld [vmem:[%s6685_s2 + $0x164] ss:$8 sps:$4 sm:$0xff]  }
  0x5e   :  { %472 = vmatprep.subr.bf16.mxu0 %v5220_v26  ;;  %v5266_v26 = vld [vmem:[%s6685_s2 + $0x160] ss:$8 sps:$4 sm:$0xff]  }
  0x60   :  { %4840 = vmatpush3.bf16.msra.mxu1 %v5693_v2 }
  0x61   :  { %4841 = vmatprep.subr.bf16.mxu1 %v5711_v5 }
  0x64   :  { %4842 = vmatpush3.bf16.msra.mxu1 %v5711_v5 }
  0x65   :  { %4847 = vmatprep.subr.bf16.mxu1 %v5680_v0 }
  0x67   :  { %4844 = vmatmul.mubr.msk.bf16.vlgmr.msra.gmra.mrb[8].mxu1 %vm131_vm0, %v5197_v21  ;;  %v5262_v21 = vld [vmem:[%s6685_s2 + $0x144] ss:$8 sps:$4 sm:$0xff]  }
  0x68   :  { %4848 = vmatpush3.bf16.msra.mxu1 %v5680_v0  ;;  %4855 = vmatprep.mubr.msk.bf16.mxu1 %vm131_vm0, %v5198_v22  ;;  %v5260_v22 = vld [vmem:[%s6685_s2 + $0x140] ss:$8 sps:$4 sm:$0xff]  }
  0x69   :  { %4849 = vmatprep.subr.bf16.mxu1 %v5685_v1 }
  0x6c   :  { %4850 = vmatpush3.bf16.msra.mxu1 %v5685_v1  ;;  %v5242_v1 = vld [vmem:[%s6685_s2 + $0xe0] ss:$8 sps:$4 sm:$0xff]  }
  0x6d   :  { %4851 = vmatprep.subr.bf16.mxu1 %v5693_v2 }
  0x70   :  { %4852 = vmatpush3.bf16.msra.mxu1 %v5693_v2 }
  0x71   :  { %4853 = vmatprep.subr.bf16.mxu1 %v5711_v5 }
  0x74   :  { %4854 = vmatpush3.bf16.msra.mxu1 %v5711_v5 }
  0x77   :  { %4856 = vmatmul.mubr.msk.bf16.vlgmr.msra.gmra.mrb[12].mxu1 %vm131_vm0, %v5199_v23  ;;  %v5265_v23 = vld [vmem:[%s6685_s2 + $0x154] ss:$8 sps:$4 sm:$0xff]  }
  0x78   :  { %1260 = vmatprep.mubr.bf16.mxu1 %v5561_v27 }
 0x11a   :  { %v4821_v28 = vpop.f32.mrb[0].mxu1  ;;  %v5818_v29 = vpop.f32.mrb[0].mxu0 }
 0x11b   :  { %v256_v30 = vpop.f32.mrb[1].mxu1  ;;  %v172_v31 = vpop.f32.mrb[1].mxu0 }
 0x11c   :  { %v4822_v32 = vpop.f32.mrb[2].mxu1  ;;  %v4810_v33 = vpop.f32.mrb[2].mxu0 }
 0x11d   :  { %v272_v34 = vpack.c.bf16 %v4822_v32, %v4821_v28  ;;  %v259_v35 = vpop.f32.mrb[3].mxu1  ;;  %v188_v37 = vpack.c.bf16 %v4810_v33, %v5818_v29  ;;  %v175_v38 = vpop.f32.mrb[3].mxu0  ;;  %v5271_v28 = vld [vmem:[%s6685_s2 + $0x174] ss:$8 sps:$4 sm:$0xff]   ;;  %v5269_v29 = vld [vmem:[%s6685_s2 + $0x170] ss:$8 sps:$4 sm:$0xff]  }
 0x11e   :  { %v271_v39 = vpack.c.bf16 %v259_v35, %v256_v30  ;;  %v187_v41 = vpack.c.bf16 %v175_v38, %v172_v31  ;;  %v5274_v30 = vld [vmem:[%s6685_s2 + $0x184] ss:$8 sps:$4 sm:$0xff]   ;;  %v5272_v31 = vld [vmem:[%s6685_s2 + $0x180] ss:$8 sps:$4 sm:$0xff]   ;;  %v5277_v32 = vld [vmem:[%s6685_s2 + $0x194] ss:$8 sps:$4 sm:$0xff]  }
 0x11f   :  { %v5275_v33 = vld [vmem:[%s6685_s2 + $0x190] ss:$8 sps:$4 sm:$0xff]   ;;  %v5278_v35 = vld [vmem:[%s6685_s2 + $0x1a0] ss:$8 sps:$4 sm:$0xff]   ;;  %v5286_v38 = vld [vmem:[%s6685_s2 + $0x1c4] ss:$8 sps:$4 sm:$0xff]  }
 0x120   :  { %4152 = vmatmul.mubr.msk.bf16.vlgmr.msra.gmra.mrb[4].mxu0 %vm346_vm1, %v271_v39  ;;  %v5284_v39 = vld [vmem:[%s6685_s2 + $0x1c0] ss:$8 sps:$4 sm:$0xff]  }
 0x121   :  { %473 = vmatpush1.bf16.msra.mxu0 %v5218_v36  ;;  %395 = vmatprep.mubr.bf16.mxu0 %v5561_v27  ;;  %v5283_v36 = vld [vmem:[%s6685_s2 + $0x1b4] ss:$8 sps:$4 sm:$0xff]  }
 0x122   :  { %474 = vmatprep.subr.bf16.mxu0 %v5223_v40  ;;  %v5289_v40 = vld [vmem:[%s6685_s2 + $0x1d4] ss:$8 sps:$4 sm:$0xff]  }
 0x125   :  { %475 = vmatpush1.bf16.msra.mxu0 %v5221_v42  ;;  %v1163_v42 = vlaneseq }
 0x126   :  { %476 = vmatprep.subr.bf16.mxu0 %v5226_v43 }
 0x127   :  { %v1164_v43 = vshrl.u32 %v1163_v42, 7  ;;  %v5294_v42 = vld [vmem:[%s6687_s4 + $0x8] sm:$0xff]  }
 0x128   :  { %4153 = vmatmul.mubr.msk.bf16.gmra.mrb[8].mxu0 %vm346_vm1, %v272_v34  ;;  %v5280_v34 = vld [vmem:[%s6685_s2 + $0x1a4] ss:$8 sps:$4 sm:$0xff]  }
 0x129   :  { %477 = vmatpush1.bf16.msra.mxu0 %v5224_v44  ;;  %504 = vmatprep.mubr.bf16.mxu0 %v5561_v27  ;;  %v1165_v44 = vsub.s32 0, %v1164_v43 }
 0x12a   :  { %478 = vmatprep.subr.bf16.mxu0 %v5229_v45  ;;  %v5849_v48 = vpop.f32.mrb[4].mxu1  ;;  %v1161_v45 = vld [vmem:[#allocation2] sm:$0x3] }
 0x12b   :  { %v580_v49 = vpop.f32.mrb[5].mxu1 }
 0x12c   :  { %v5851_v50 = vpop.f32.mrb[6].mxu1 }
 0x12d   :  { %479 = vmatpush1.bf16.msra.mxu0 %v5227_v46  ;;  %v596_v52 = vpack.c.bf16 %v5851_v50, %v5849_v48  ;;  %v583_v53 = vpop.f32.mrb[7].mxu1  ;;  %v1169_v46 = vsub.s32 1, %v1164_v43  ;;  %v5295_v43 = vld [vmem:[%s6688_s5 + $0xd0] sm:$0xff]  }
 0x12e   :  { %480 = vmatprep.subr.bf16.mxu0 %v5232_v47  ;;  %v595_v55 = vpack.c.bf16 %v583_v53, %v580_v49  ;;  %v1166_v47 = vrot.slane %v1161_v45, %v1165_v44  ;;  %v5305_v44 = vld [vmem:[%s6688_s5 + $0x60] sm:$0xff]  }
 0x12f   :  { %v1170_v48 = vrot.slane %v1161_v45, %v1169_v46  ;;  %v5296_v45 = vld [vmem:[%s6688_s5 + $0xd8] sm:$0xff]   ;;  %v5306_v46 = vld [vmem:[%s6688_s5 + $0x68] sm:$0xff]  }
 0x131   :  { %481 = vmatpush1.bf16.msra.mxu0 %v5230_v51 }
 0x132   :  { %482 = vmatprep.subr.bf16.mxu0 %v5235_v54 }
 0x135   :  { %483 = vmatpush1.bf16.msra.mxu0 %v5233_v56 }
 0x136   :  { %676 = vmatprep.subr.bf16.mxu0 %v5238_v57 }
 0x138   :  { %4166 = vmatmul.mubr.msk.bf16.vlgmr.msra.gmra.mrb[4].mxu0 %vm346_vm1, %v187_v41  ;;  %v5287_v41 = vld [vmem:[%s6685_s2 + $0x1d0] ss:$8 sps:$4 sm:$0xff]  }
 0x139   :  { %677 = vmatpush1.bf16.msra.mxu0 %v5236_v58  ;;  %514 = vmatprep.mubr.bf16.mxu0 %v5561_v27 }
 0x13a   :  { %678 = vmatprep.subr.bf16.mxu0 %v5241_v59  ;;  %v5881_v62 = vpop.f32.mrb[8].mxu1 }
 0x13b   :  { %v792_v63 = vpop.f32.mrb[9].mxu1 }
 0x13c   :  { %v5883_v0 = vpop.f32.mrb[10].mxu1 }
 0x13d   :  { %679 = vmatpush1.bf16.msra.mxu0 %v5239_v60  ;;  %v808_v2 = vpack.c.bf16 %v5883_v0, %v5881_v62  ;;  %v795_v3 = vpop.f32.mrb[11].mxu1 }
 0x13e   :  { %680 = vmatprep.subr.bf16.mxu0 %v5244_v61  ;;  %v807_v5 = vpack.c.bf16 %v795_v3, %v792_v63 }
 0x140   :  { %4167 = vmatmul.mubr.msk.bf16.gmra.mrb[8].mxu0 %vm346_vm1, %v188_v37  ;;  %v5281_v37 = vld [vmem:[%s6685_s2 + $0x1b0] ss:$8 sps:$4 sm:$0xff]  }
 0x141   :  { %681 = vmatpush1.bf16.msra.mxu0 %v5242_v1  ;;  %708 = vmatprep.mubr.bf16.mxu0 %v5561_v27 }
 0x142   :  { %682 = vmatprep.subr.bf16.mxu0 %v5247_v4 }
 0x145   :  { %683 = vmatpush1.bf16.msra.mxu0 %v5245_v6 }
 0x146   :  { %684 = vmatprep.subr.bf16.mxu0 %v5250_v7 }
 0x149   :  { %685 = vmatpush1.bf16.msra.mxu0 %v5248_v8 }
 0x14a   :  { %686 = vmatprep.subr.bf16.mxu0 %v5253_v9  ;;  %v5913_v12 = vpop.f32.mrb[12].mxu1 }
 0x14b   :  { %v1004_v13 = vpop.f32.mrb[13].mxu1 }
 0x14c   :  { %v5915_v14 = vpop.f32.mrb[14].mxu1 }
 0x14d   :  { %687 = vmatpush1.bf16.msra.mxu0 %v5251_v10  ;;  %v1020_v16 = vpack.c.bf16 %v5915_v14, %v5913_v12  ;;  %v1007_v17 = vpop.f32.mrb[15].mxu1 }
 0x14e   :  { %888 = vmatprep.subr.bf16.mxu0 %v5256_v11  ;;  %v1019_v19 = vpack.c.bf16 %v1007_v17, %v1004_v13 }
 0x150   :  { %4200 = vmatmul.mubr.msk.bf16.vlgmr.msra.gmra.mrb[4].mxu0 %vm346_vm1, %v595_v55 }
 0x151   :  { %889 = vmatpush1.bf16.msra.mxu0 %v5254_v15  ;;  %718 = vmatprep.mubr.bf16.mxu0 %v5561_v27 }
 0x152   :  { %890 = vmatprep.subr.bf16.mxu0 %v5259_v18 }
 0x155   :  { %891 = vmatpush1.bf16.msra.mxu0 %v5257_v20 }
 0x156   :  { %892 = vmatprep.subr.bf16.mxu0 %v5262_v21 }
 0x158   :  { %4201 = vmatmul.mubr.msk.bf16.gmra.mrb[8].mxu0 %vm346_vm1, %v596_v52 }
 0x159   :  { %893 = vmatpush1.bf16.msra.mxu0 %v5260_v22  ;;  %920 = vmatprep.mubr.bf16.mxu0 %v5561_v27 }
 0x15a   :  { %894 = vmatprep.subr.bf16.mxu0 %v5265_v23 }
 0x15d   :  { %895 = vmatpush1.bf16.msra.mxu0 %v5263_v24 }
 0x15e   :  { %896 = vmatprep.subr.bf16.mxu0 %v5268_v25 }
 0x161   :  { %897 = vmatpush1.bf16.msra.mxu0 %v5266_v26 }
 0x162   :  { %898 = vmatprep.subr.bf16.mxu0 %v5271_v28 }
 0x165   :  { %899 = vmatpush1.bf16.msra.mxu0 %v5269_v29 }
 0x166   :  { %1100 = vmatprep.subr.bf16.mxu0 %v5274_v30 }
 0x168   :  { %4234 = vmatmul.mubr.msk.bf16.vlgmr.msra.gmra.mrb[4].mxu0 %vm346_vm1, %v807_v5 }
 0x169   :  { %1101 = vmatpush1.bf16.msra.mxu0 %v5272_v31  ;;  %930 = vmatprep.mubr.bf16.mxu0 %v5561_v27 }
 0x16a   :  { %1102 = vmatprep.subr.bf16.mxu0 %v5277_v32 }
 0x16d   :  { %1103 = vmatpush1.bf16.msra.mxu0 %v5275_v33 }
 0x16e   :  { %1104 = vmatprep.subr.bf16.mxu0 %v5280_v34 }
 0x170   :  { %4235 = vmatmul.mubr.msk.bf16.gmra.mrb[8].mxu0 %vm346_vm1, %v808_v2 }
 0x171   :  { %1105 = vmatpush1.bf16.msra.mxu0 %v5278_v35  ;;  %1132 = vmatprep.mubr.bf16.mxu0 %v5561_v27 }
 0x172   :  { %1106 = vmatprep.subr.bf16.mxu0 %v5283_v36 }
 0x175   :  { %1107 = vmatpush1.bf16.msra.mxu0 %v5281_v37 }
 0x176   :  { %1108 = vmatprep.subr.bf16.mxu0 %v5286_v38  ;;  %v5290_v38 = vld [vmem:[%s6687_s4] sm:$0xff]  }
 0x179   :  { %1109 = vmatpush1.bf16.msra.mxu0 %v5284_v39  ;;  %v5291_v39 = vld [vmem:[%s6687_s4 + $0x10] sm:$0xff]  }
 0x17a   :  { %1110 = vmatprep.subr.bf16.mxu0 %v5289_v40  ;;  %v5292_v40 = vld [vmem:[%s6688_s5 + $0xc0] sm:$0xff]  }
 0x17d   :  { %1111 = vmatpush1.bf16.msra.mxu0 %v5287_v41  ;;  %v5293_v41 = vld [vmem:[%s6688_s5 + $0xc8] sm:$0xff]  }
 0x180   :  { %4268 = vmatmul.mubr.msk.bf16.vlgmr.msra.gmra.mrb[4].mxu0 %vm346_vm1, %v1019_v19 }
 0x181   :  { %1142 = vmatprep.mubr.bf16.mxu0 %v5561_v27 }
 0x188   :  { %4269 = vmatmul.mubr.msk.bf16.gmra.mrb[8].mxu0 %vm346_vm1, %v1020_v16 }
 0x189   :  { %1653 = vmatprep.mubr.bf16.mxu0 %v5561_v27 }
 0x253   :  { %v1134_v49 = vpop.f32.mrb[4].mxu0 }
 0x254   :  { %v1173_v50 = vadd.f32 %v1166_v47, %v1134_v49  ;;  %v1136_v51 = vpop.f32.mrb[5].mxu0  ;;  %v5298_v49 = vld [vmem:[%s6688_s5 + $0xe8] sm:$0xff]  }
 0x255   :  { %v1174_v52 = vadd.f32 %v1170_v48, %v1136_v51  ;;  %v1138_v53 = vpop.f32.mrb[6].mxu0  ;;  %v5299_v51 = vld [vmem:[%s6688_s5 + $0xf0] sm:$0xff]  }
 0x256   :  { %v1181_v54 = vmul.f32 0.5, %v1173_v50  ;;  %v1175_v55 = vadd.f32 %v1166_v47, %v1138_v53  ;;  %v1140_v56 = vpop.f32.mrb[7].mxu0  ;;  %v5308_v50 = vld [vmem:[%s6688_s5 + $0x78] sm:$0xff]  }
 0x257   :  { %v1182_v57 = vmul.f32 0.5, %v1174_v52  ;;  %v1176_v58 = vadd.f32 %v1170_v48, %v1140_v56  ;;  %v5309_v52 = vld [vmem:[%s6688_s5 + $0x80] sm:$0xff]   ;;  %v5300_v53 = vld [vmem:[%s6688_s5 + $0xf8] sm:$0xff]   ;;  %v5311_v56 = vld [vmem:[%s6688_s5 + $0x90] sm:$0xff]  }
 0x258   :  { %5438 = vtanh.f32 %v1181_v54  ;;  %v1183_v59 = vmul.f32 0.5, %v1175_v55  ;;  %v5310_v54 = vld [vmem:[%s6688_s5 + $0x88] sm:$0xff]   ;;  %v5301_v55 = vld [vmem:[%s6688_s5 + $0x100] sm:$0xff]  }
 0x259   :  { %5440 = vtanh.f32 %v1182_v57  ;;  %v1184_v60 = vmul.f32 0.5, %v1176_v58  ;;  %v5302_v57 = vld [vmem:[%s6688_s5 + $0x108] sm:$0xff]   ;;  %v5312_v58 = vld [vmem:[%s6688_s5 + $0x98] sm:$0xff]  }
 0x25a   :  { %5442 = vtanh.f32 %v1183_v59  ;;  %v5303_v59 = vld [vmem:[%s6688_s5 + $0x110] sm:$0xff]  }
 0x25b   :  { %5444 = vtanh.f32 %v1184_v60  ;;  %v1144_v61 = vpop.f32.mrb[8].mxu0  ;;  %v5313_v60 = vld [vmem:[%s6688_s5 + $0xa0] sm:$0xff]  }
 0x25c   :  { %v1177_v62 = vadd.f32 %v1166_v47, %v1144_v61  ;;  %v1146_v63 = vpop.f32.mrb[9].mxu0  ;;  %v5304_v61 = vld [vmem:[%s6688_s5 + $0x118] sm:$0xff]  }
 0x25d   :  { %v1178_v0 = vadd.f32 %v1170_v48, %v1146_v63  ;;  %v1148_v1 = vpop.f32.mrb[10].mxu0  ;;  %v5315_v63 = vld [vmem:[%s6688_s5 + $0xb0] sm:$0xff]  }
 0x25e   :  { %v1185_v2 = vmul.f32 0.5, %v1177_v62  ;;  %v1179_v3 = vadd.f32 %v1166_v47, %v1148_v1  ;;  %v1150_v4 = vpop.f32.mrb[11].mxu0  ;;  %v5297_v47 = vld [vmem:[%s6688_s5 + $0xe0] sm:$0xff]   ;;  %v5314_v62 = vld [vmem:[%s6688_s5 + $0xa8] sm:$0xff]  }
 0x25f   :  { %v1186_v5 = vmul.f32 0.5, %v1178_v0  ;;  %v1180_v6 = vadd.f32 %v1170_v48, %v1150_v4  ;;  %v5307_v48 = vld [vmem:[%s6688_s5 + $0x70] sm:$0xff]   ;;  %v5316_v0 = vld [vmem:[%s6688_s5 + $0xb8] sm:$0xff]  }
 0x260   :  { %5446 = vtanh.f32 %v1185_v2  ;;  %v1187_v7 = vmul.f32 0.5, %v1179_v3 }
 0x261   :  { %5448 = vtanh.f32 %v1186_v5  ;;  %v1188_v8 = vmul.f32 0.5, %v1180_v6 }
 0x262   :  { %v5439_v9 = vpop.eup %5438  ;;  %5450 = vtanh.f32 %v1187_v7 }
 0x263   :  { %v5441_v10 = vpop.eup %5440  ;;  %v1197_v11 = vadd.f32 1.0, %v5439_v9  ;;  %5452 = vtanh.f32 %v1188_v8 }
 0x264   :  { %v5443_v12 = vpop.eup %5442  ;;  %v1198_v13 = vadd.f32 1.0, %v5441_v10 }
 0x265   :  { %v5445_v14 = vpop.eup %5444  ;;  %v1199_v15 = vadd.f32 1.0, %v5443_v12  ;;  %v1205_v17 = vmul.f32 0.5, %v1197_v11 }
 0x266   :  { %v1200_v16 = vadd.f32 1.0, %v5445_v14  ;;  %v1206_v19 = vmul.f32 0.5, %v1198_v13 }
 0x267   :  { %v1207_v18 = vmul.f32 0.5, %v1199_v15 }
 0x268   :  { %v1208_v20 = vmul.f32 0.5, %v1200_v16 }
 0x269   :  { %v6006_v21 = vpack.c.bf16 %v1207_v18, %v1205_v17  ;;  %v5329_v18 = vld [vmem:[%s6687_s4 + $0x20] sm:$0xff]  }
 0x26a   :  { %v5447_v22 = vpop.eup %5446  ;;  %v6008_v23 = vpack.c.bf16 %v1208_v20, %v1206_v19  ;;  %v5317_v20 = vld [vmem:[%s6688_s5] sm:$0xff]  }
 0x26b   :  { %v5449_v24 = vpop.eup %5448  ;;  %v1201_v25 = vadd.f32 1.0, %v5447_v22  ;;  %v5318_v22 = vld [vmem:[%s6688_s5 + $0x8] sm:$0xff]  }
 0x26c   :  { %v5451_v26 = vpop.eup %5450  ;;  %v1202_v28 = vadd.f32 1.0, %v5449_v24  ;;  %1228 = vmatprep.subr.bf16.mxu1 %v6008_v23  ;;  %1621 = vmatprep.subr.bf16.mxu0 %v6008_v23  ;;  %v5319_v24 = vld [vmem:[%s6688_s5 + $0x10] sm:$0xff]  }
 0x26d   :  { %v5453_v29 = vpop.eup %5452  ;;  %v1203_v30 = vadd.f32 1.0, %v5451_v26  ;;  %1229 = vmatpush1.bf16.msra.mxu1 %v6006_v21  ;;  %1622 = vmatpush1.bf16.msra.mxu0 %v6006_v21  ;;  %v1209_v32 = vmul.f32 0.5, %v1201_v25  ;;  %v5320_v25 = vld [vmem:[%s6688_s5 + $0x18] sm:$0xff]   ;;  %v5321_v26 = vld [vmem:[%s6688_s5 + $0x20] sm:$0xff]  }
 0x26e   :  { %v1204_v31 = vadd.f32 1.0, %v5453_v29  ;;  %v1210_v34 = vmul.f32 0.5, %v1202_v28  ;;  %v5322_v28 = vld [vmem:[%s6688_s5 + $0x28] sm:$0xff]   ;;  %v5323_v29 = vld [vmem:[%s6688_s5 + $0x30] sm:$0xff]  }
 0x26f   :  { %v1211_v33 = vmul.f32 0.5, %v1203_v30  ;;  %v5324_v30 = vld [vmem:[%s6688_s5 + $0x38] sm:$0xff]  }
 0x270   :  { %v1212_v35 = vmul.f32 0.5, %v1204_v31  ;;  %v5325_v31 = vld [vmem:[%s6688_s5 + $0x40] sm:$0xff]  }
 0x271   :  { %v6014_v36 = vpack.c.bf16 %v1211_v33, %v1209_v32  ;;  %v5326_v32 = vld [vmem:[%s6688_s5 + $0x48] sm:$0xff]   ;;  %v5327_v33 = vld [vmem:[%s6688_s5 + $0x50] sm:$0xff]  }
 0x272   :  { %v6016_v37 = vpack.c.bf16 %v1212_v35, %v1210_v34  ;;  %v5328_v34 = vld [vmem:[%s6688_s5 + $0x58] sm:$0xff]  }
 0x273   :  { %v5330_v35 = vld [vmem:[%s6687_s4 + $0x18] sm:$0xff]   ;;  %s5564_s4 = smov [#allocation8]  }
 0x274   :  { %1230 = vmatprep.subr.bf16.mxu1 %v6016_v37  ;;  %1623 = vmatprep.subr.bf16.mxu0 %v6016_v37  ;;  %s4102_s24 = sshll.u32 %s5564_s4, 4  ;;  %s4103_s24 = int_to_ptr.vmem [resolvable:$true] %s4102_s24 }
 0x275   :  { %1231 = vmatpush1.bf16.msra.mxu1 %v6014_v36  ;;  %1624 = vmatpush1.bf16.msra.mxu0 %v6014_v36  ;;  %s5528_s27 = scalar_lea.vmem %s4103_s24, 32  ;;  %p5533_p11 = scmp.lt.s32.totalorder %s4103_s24, %s4103_s24 }
 0x276   :  { %1308 = vmatprep.subr.bf16.mxu1 %v6008_v23  ;;  %1766 = vmatprep.subr.bf16.mxu0 %v5561_v27  ;;  %p5529_p10 = scmp.ne.s32.totalorder %s4103_s24, %s5528_s27  ;;  %p5534_p12 = scmp.lt.s32.totalorder %s5528_s27, %s5528_s27 }
 0x278   :  { %4271 = vmatmul.mubr.msk.bf16.vlgmr.msra.gmra.mrb[16].mxu1 %vm1224_vm2, %v5290_v38  ;;  %4329 = vmatmul.mubr.msk.bf16.vlgmr.msra.gmra.mrb[12].mxu0 %vm1224_vm2, %v5291_v39  ;;  %v5334_v38 = vld [vmem:[%s6688_s5 + $0x190] sm:$0xff]   ;;  %p5535_p13 = por %p5534_p12, %p5533_p11 }
 0x279   :  { %1309 = vmatpush1.bf16.msra.mxu1 %v6006_v21  ;;  %1767 = vmatpush1.bf16.msra.mxu0 %v5292_v40  ;;  %v5337_v39 = vld [vmem:[%s6688_s5 + $0x130] sm:$0xff]   ;;  %v5336_v40 = vld [vmem:[%s6688_s5 + $0x198] sm:$0xff]  }
 0x27a   :  { %1310 = vmatprep.subr.bf16.mxu1 %v6016_v37  ;;  %1768 = vmatprep.subr.bf16.mxu0 %v5561_v27  ;;  %p5536_p0 = pnand %p5535_p13, %p5529_p10 }
 0x27b   :  { %1340 = vmatprep.mubr.bf16.mxu1 %v5561_v27 }
 0x27d   :  { %1311 = vmatpush1.bf16.msra.mxu1 %v6014_v36  ;;  %1769 = vmatpush1.bf16.msra.mxu0 %v5293_v41  ;;  %v5339_v41 = vld [vmem:[%s6688_s5 + $0x138] sm:$0xff]  }
 0x27e   :  { %1770 = vmatprep.subr.bf16.mxu0 %v5561_v27  ;;  %1453 = vmatprep.subr.bf16.mxu1 %v5561_v27 }
 0x280   :  { %4275 = vmatmul.mubr.msk.bf16.vlgmr.msra.gmra.mrb[20].mxu1 %vm1224_vm2, %v5294_v42  ;;  %v5338_v42 = vld [vmem:[%s6688_s5 + $0x1a0] sm:$0xff]  }
 0x281   :  { %1771 = vmatpush1.bf16.msra.mxu0 %v5295_v43  ;;  %1454 = vmatpush1.bf16.msra.mxu1 %v5305_v44  ;;  %v5341_v43 = vld [vmem:[%s6688_s5 + $0x140] sm:$0xff]   ;;  %v5340_v44 = vld [vmem:[%s6688_s5 + $0x1a8] sm:$0xff]  }
 0x282   :  { %1772 = vmatprep.subr.bf16.mxu0 %v5561_v27  ;;  %1455 = vmatprep.subr.bf16.mxu1 %v5561_v27 }
 0x285   :  { %1773 = vmatpush1.bf16.msra.mxu0 %v5296_v45  ;;  %1456 = vmatpush1.bf16.msra.mxu1 %v5306_v46  ;;  %v5343_v45 = vld [vmem:[%s6688_s5 + $0x148] sm:$0xff]   ;;  %v5342_v46 = vld [vmem:[%s6688_s5 + $0x1b0] sm:$0xff]  }
 0x286   :  { %1774 = vmatprep.subr.bf16.mxu0 %v5561_v27  ;;  %1457 = vmatprep.subr.bf16.mxu1 %v5561_v27 }
 0x289   :  { %1775 = vmatpush1.bf16.msra.mxu0 %v5297_v47  ;;  %1458 = vmatpush1.bf16.msra.mxu1 %v5307_v48  ;;  %v5345_v47 = vld [vmem:[%s6688_s5 + $0x150] sm:$0xff]   ;;  %v5344_v48 = vld [vmem:[%s6688_s5 + $0x1b8] sm:$0xff]  }
 0x28a   :  { %1776 = vmatprep.subr.bf16.mxu0 %v5561_v27  ;;  %1459 = vmatprep.subr.bf16.mxu1 %v5561_v27 }
 0x28d   :  { %1777 = vmatpush1.bf16.msra.mxu0 %v5298_v49  ;;  %1460 = vmatpush1.bf16.msra.mxu1 %v5308_v50  ;;  %v5347_v49 = vld [vmem:[%s6688_s5 + $0x158] sm:$0xff]   ;;  %v5346_v50 = vld [vmem:[%s6688_s5 + $0x1c0] sm:$0xff]  }
 0x28e   :  { %1778 = vmatprep.subr.bf16.mxu0 %v5561_v27  ;;  %1461 = vmatprep.subr.bf16.mxu1 %v5561_v27 }
 0x291   :  { %1779 = vmatpush1.bf16.msra.mxu0 %v5299_v51  ;;  %1462 = vmatpush1.bf16.msra.mxu1 %v5309_v52  ;;  %v5348_v51 = vld [vmem:[%s6688_s5 + $0x1c8] sm:$0xff]   ;;  %v5349_v52 = vld [vmem:[%s6688_s5 + $0x160] sm:$0xff]  }
 0x292   :  { %1780 = vmatprep.subr.bf16.mxu0 %v5561_v27  ;;  %1463 = vmatprep.subr.bf16.mxu1 %v5561_v27 }
 0x295   :  { %1781 = vmatpush1.bf16.msra.mxu0 %v5300_v53  ;;  %1464 = vmatpush1.bf16.msra.mxu1 %v5310_v54  ;;  %v5350_v53 = vld [vmem:[%s6688_s5 + $0x1d0] sm:$0xff]   ;;  %v5351_v54 = vld [vmem:[%s6688_s5 + $0x168] sm:$0xff]  }
 0x296   :  { %1782 = vmatprep.subr.bf16.mxu0 %v5561_v27  ;;  %1465 = vmatprep.subr.bf16.mxu1 %v5561_v27 }
 0x299   :  { %1783 = vmatpush1.bf16.msra.mxu0 %v5301_v55  ;;  %1466 = vmatpush1.bf16.msra.mxu1 %v5311_v56  ;;  %v5352_v55 = vld [vmem:[%s6688_s5 + $0x1d8] sm:$0xff]   ;;  %v5353_v56 = vld [vmem:[%s6688_s5 + $0x170] sm:$0xff]  }
 0x29a   :  { %1784 = vmatprep.subr.bf16.mxu0 %v5561_v27  ;;  %1467 = vmatprep.subr.bf16.mxu1 %v5561_v27 }
 0x29d   :  { %1785 = vmatpush1.bf16.msra.mxu0 %v5302_v57  ;;  %1468 = vmatpush1.bf16.msra.mxu1 %v5312_v58  ;;  %v5354_v57 = vld [vmem:[%s6688_s5 + $0x178] sm:$0xff]  }
 0x29e   :  { %1786 = vmatprep.subr.bf16.mxu0 %v5561_v27  ;;  %1469 = vmatprep.subr.bf16.mxu1 %v5561_v27 }
 0x2a1   :  { %1787 = vmatpush1.bf16.msra.mxu0 %v5303_v59  ;;  %1470 = vmatpush1.bf16.msra.mxu1 %v5313_v60 }
 0x2a2   :  { %1788 = vmatprep.subr.bf16.mxu0 %v5561_v27  ;;  %1471 = vmatprep.subr.bf16.mxu1 %v5561_v27 }
 0x2a5   :  { %1789 = vmatpush1.bf16.msra.mxu0 %v5304_v61  ;;  %1472 = vmatpush1.bf16.msra.mxu1 %v5314_v62 }
 0x2a6   :  { %2019 = vmatprep.subr.bf16.mxu0 %v6008_v23  ;;  %1473 = vmatprep.subr.bf16.mxu1 %v5561_v27 }
 0x2a9   :  { %1474 = vmatpush1.bf16.msra.mxu1 %v5315_v63 }
 0x2aa   :  { %1475 = vmatprep.subr.bf16.mxu1 %v5561_v27 }
 0x2ad   :  { %1476 = vmatpush1.bf16.msra.mxu1 %v5316_v0 }
 0x2ae   :  { %1569 = vmatprep.subr.bf16.mxu1 %v5561_v27 }
 0x34b   :  { %v6137_v1 = vpop.f32.mrb[16].mxu1  ;;  %v1655_v2 = vpop.f32.mrb[12].mxu0 }
 0x34c   :  { %v1264_v3 = vpop.f32.mrb[17].mxu1  ;;  %v1657_v4 = vpop.f32.mrb[13].mxu0 }
 0x34d   :  { %v1266_v5 = vpop.f32.mrb[18].mxu1  ;;  %v1659_v6 = vpop.f32.mrb[14].mxu0 }
 0x34e   :  { %v1271_v7 = vpack.c.bf16 %v1266_v5, %v6137_v1  ;;  %v1664_v8 = vpack.c.bf16 %v1659_v6, %v1655_v2  ;;  %v1268_v9 = vpop.f32.mrb[19].mxu1  ;;  %v1661_v10 = vpop.f32.mrb[15].mxu0 }
 0x34f   :  { %v1272_v11 = vpack.c.bf16 %v1268_v9, %v1264_v3  ;;  %v1665_v12 = vpack.c.bf16 %v1661_v10, %v1657_v4 }
 0x351   :  { %4366 = vmatprep.mubr.msk.bf16.mxu0 %vm131_vm0, %v1665_v12 }
 0x352   :  { %1799 = vmatmul.mubr.bf16.vlgmr.msra.gmra.mrb[16].mxu0 %v1664_v8 }
 0x353   :  { %2020 = vmatpush1.bf16.msra.mxu0 %v6006_v21  ;;  %v1342_v13 = vpop.f32.mrb[20].mxu1  ;;  %2051 = vmatprep.mubr.bf16.mxu0 %v5561_v27 }
 0x354   :  { %2021 = vmatprep.subr.bf16.mxu0 %v6016_v37  ;;  %v1344_v14 = vpop.f32.mrb[21].mxu1 }
 0x355   :  { %v1346_v15 = vpop.f32.mrb[22].mxu1 }
 0x356   :  { %v1351_v16 = vpack.c.bf16 %v1346_v15, %v1342_v13  ;;  %v1348_v17 = vpop.f32.mrb[23].mxu1 }
 0x357   :  { %v1352_v19 = vpack.c.bf16 %v1348_v17, %v1344_v14  ;;  %2022 = vmatpush1.bf16.msra.mxu0 %v6014_v36 }
 0x358   :  { %2164 = vmatprep.subr.bf16.mxu0 %v5561_v27 }
 0x359   :  { %4312 = vmatprep.mubr.msk.bf16.mxu1 %vm131_vm0, %v1352_v19 }
 0x35a   :  { %1486 = vmatmul.mubr.bf16.vlgmr.msra.gmra.mrb[24].mxu1 %v1351_v16  ;;  %4411 = vmatmul.mubr.msk.bf16.vlgmr.msra.gmra.mrb[20].mxu0 %vm1224_vm2, %v5329_v18 }
 0x35b   :  { %1570 = vmatpush1.bf16.msra.mxu1 %v5317_v20  ;;  %4325 = vmatprep.mubr.msk.bf16.mxu1 %vm131_vm0, %v1272_v11 }
 0x35c   :  { %1571 = vmatprep.subr.bf16.mxu1 %v5561_v27 }
 0x35f   :  { %1572 = vmatpush1.bf16.msra.mxu1 %v5318_v22  ;;  %v5562_v22 = vmov 0.0  }
 0x360   :  { %1573 = vmatprep.subr.bf16.mxu1 %v5561_v27 }
 0x363   :  { %1574 = vmatpush1.bf16.msra.mxu1 %v5319_v24  ;;  %v5357_v24 = vld [vmem:[#allocation7] sm:$0xff]  }
 0x364   :  { %1575 = vmatprep.subr.bf16.mxu1 %v5561_v27 }
 0x367   :  { %1576 = vmatpush1.bf16.msra.mxu1 %v5320_v25  ;;  %v5358_v25 = vld [vmem:[#allocation7 + $0x8] sm:$0xff]  }
 0x368   :  { %1577 = vmatprep.subr.bf16.mxu1 %v5561_v27 }
 0x36b   :  { %1578 = vmatpush1.bf16.msra.mxu1 %v5321_v26  ;;  %v5360_v26 = vld [vmem:[#allocation7 + $0x10] sm:$0xff]  }
 0x36c   :  { %1579 = vmatprep.subr.bf16.mxu1 %v5561_v27 }
 0x36f   :  { %1580 = vmatpush1.bf16.msra.mxu1 %v5322_v28  ;;  %v5362_v28 = vld [vmem:[#allocation7 + $0x18] sm:$0xff]  }
 0x370   :  { %1581 = vmatprep.subr.bf16.mxu1 %v5561_v27 }
 0x373   :  { %1582 = vmatpush1.bf16.msra.mxu1 %v5323_v29  ;;  %v5364_v29 = vld [vmem:[#allocation7 + $0x20] sm:$0xff]  }
 0x374   :  { %1583 = vmatprep.subr.bf16.mxu1 %v5561_v27 }
 0x377   :  { %1584 = vmatpush1.bf16.msra.mxu1 %v5324_v30 }
 0x378   :  { %1585 = vmatprep.subr.bf16.mxu1 %v5561_v27 }
 0x37b   :  { %1586 = vmatpush1.bf16.msra.mxu1 %v5325_v31 }
 0x37c   :  { %1587 = vmatprep.subr.bf16.mxu1 %v5561_v27 }
 0x37f   :  { %1588 = vmatpush1.bf16.msra.mxu1 %v5326_v32 }
 0x380   :  { %1589 = vmatprep.subr.bf16.mxu1 %v5561_v27 }
 0x383   :  { %1590 = vmatpush1.bf16.msra.mxu1 %v5327_v33 }
 0x384   :  { %1591 = vmatprep.subr.bf16.mxu1 %v5561_v27 }
 0x387   :  { %1592 = vmatpush1.bf16.msra.mxu1 %v5328_v34 }
 0x388   :  { %1820 = vmatprep.subr.bf16.mxu1 %v6008_v23  ;;  %v5331_v23 = vld [vmem:[%s6688_s5 + $0x180] sm:$0xff]  }
 0x389   :  { %2165 = vmatpush1.bf16.msra.mxu0 %v5331_v23 }
 0x38a   :  { %1602 = vmatmul.mubr.bf16.vlgmr.msra.gmra.mrb[28].mxu1 %v1271_v7  ;;  %2166 = vmatprep.subr.bf16.mxu0 %v5561_v27 }
 0x38b   :  { %1821 = vmatpush1.bf16.msra.mxu1 %v6006_v21  ;;  %1852 = vmatprep.mubr.bf16.mxu1 %v5561_v27  ;;  %v5333_v21 = vld [vmem:[%s6688_s5 + $0x120] sm:$0xff]  }
 0x38c   :  { %1822 = vmatprep.subr.bf16.mxu1 %v6016_v37  ;;  %v5332_v37 = vld [vmem:[%s6688_s5 + $0x188] sm:$0xff]  }
 0x38d   :  { %2167 = vmatpush1.bf16.msra.mxu0 %v5332_v37 }
 0x38e   :  { %2168 = vmatprep.subr.bf16.mxu0 %v5561_v27 }
 0x38f   :  { %1823 = vmatpush1.bf16.msra.mxu1 %v6014_v36  ;;  %v5335_v36 = vld [vmem:[%s6688_s5 + $0x128] sm:$0xff]  }
 0x390   :  { %1965 = vmatprep.subr.bf16.mxu1 %v5561_v27 }
 0x391   :  { %2169 = vmatpush1.bf16.msra.mxu0 %v5334_v38 }
 0x392   :  { %4370 = vmatmul.mubr.msk.bf16.vlgmr.msra.gmra.mrb[32].mxu1 %vm1224_vm2, %v5330_v35  ;;  %2170 = vmatprep.subr.bf16.mxu0 %v5561_v27 }
 0x393   :  { %1966 = vmatpush1.bf16.msra.mxu1 %v5333_v21  ;;  %v4449_v21 = vld [vmem:[%s6689_s6] ss:$0 sm:$0xff] }
 0x394   :  { %1967 = vmatprep.subr.bf16.mxu1 %v5561_v27 }
 0x395   :  { %2171 = vmatpush1.bf16.msra.mxu0 %v5336_v40 }
 0x396   :  { %2172 = vmatprep.subr.bf16.mxu0 %v5561_v27 }
 0x397   :  { %1968 = vmatpush1.bf16.msra.mxu1 %v5335_v36 }
 0x398   :  { %1969 = vmatprep.subr.bf16.mxu1 %v5561_v27 }
 0x399   :  { %2173 = vmatpush1.bf16.msra.mxu0 %v5338_v42 }
 0x39a   :  { %2174 = vmatprep.subr.bf16.mxu0 %v5561_v27 }
 0x39b   :  { %1970 = vmatpush1.bf16.msra.mxu1 %v5337_v39 }
 0x39c   :  { %1971 = vmatprep.subr.bf16.mxu1 %v5561_v27 }
 0x39d   :  { %2175 = vmatpush1.bf16.msra.mxu0 %v5340_v44 }
 0x39e   :  { %2176 = vmatprep.subr.bf16.mxu0 %v5561_v27 }
 0x39f   :  { %1972 = vmatpush1.bf16.msra.mxu1 %v5339_v41 }
 0x3a0   :  { %1973 = vmatprep.subr.bf16.mxu1 %v5561_v27 }
 0x3a1   :  { %2177 = vmatpush1.bf16.msra.mxu0 %v5342_v46 }
 0x3a2   :  { %2178 = vmatprep.subr.bf16.mxu0 %v5561_v27 }
 0x3a3   :  { %1974 = vmatpush1.bf16.msra.mxu1 %v5341_v43 }
 0x3a4   :  { %1975 = vmatprep.subr.bf16.mxu1 %v5561_v27 }
 0x3a5   :  { %2179 = vmatpush1.bf16.msra.mxu0 %v5344_v48 }
 0x3a6   :  { %2180 = vmatprep.subr.bf16.mxu0 %v5561_v27 }
 0x3a7   :  { %1976 = vmatpush1.bf16.msra.mxu1 %v5343_v45 }
 0x3a8   :  { %1977 = vmatprep.subr.bf16.mxu1 %v5561_v27 }
 0x3a9   :  { %2181 = vmatpush1.bf16.msra.mxu0 %v5346_v50 }
 0x3aa   :  { %2182 = vmatprep.subr.bf16.mxu0 %v5561_v27 }
 0x3ab   :  { %1978 = vmatpush1.bf16.msra.mxu1 %v5345_v47 }
 0x3ac   :  { %1979 = vmatprep.subr.bf16.mxu1 %v5561_v27 }
 0x3ad   :  { %2183 = vmatpush1.bf16.msra.mxu0 %v5348_v51 }
 0x3ae   :  { %2184 = vmatprep.subr.bf16.mxu0 %v5561_v27 }
 0x3af   :  { %1980 = vmatpush1.bf16.msra.mxu1 %v5347_v49 }
 0x3b0   :  { %1981 = vmatprep.subr.bf16.mxu1 %v5561_v27 }
 0x3b1   :  { %2185 = vmatpush1.bf16.msra.mxu0 %v5350_v53  ;;  %v5356_v53 = vld [vmem:[#allocation5 + $0x8] sm:$0xff]  }
 0x3b2   :  { %2186 = vmatprep.subr.bf16.mxu0 %v5561_v27 }
 0x3b3   :  { %1982 = vmatpush1.bf16.msra.mxu1 %v5349_v52  ;;  %v5355_v52 = vld [vmem:[#allocation5] sm:$0xff]  }
 0x3b4   :  { %1983 = vmatprep.subr.bf16.mxu1 %v5561_v27 }
 0x3b5   :  { %2187 = vmatpush1.bf16.msra.mxu0 %v5352_v55  ;;  %v5361_v55 = vld [vmem:[#allocation7 + $0x38] sm:$0xff]  }
 0x3b6   :  { %4887 = vmatprep.subr.bf16.mxu0 %v5562_v22 }
 0x3b7   :  { %1984 = vmatpush1.bf16.msra.mxu1 %v5351_v54  ;;  %v5359_v54 = vld [vmem:[#allocation7 + $0x30] sm:$0xff]  }
 0x3b8   :  { %1985 = vmatprep.subr.bf16.mxu1 %v5561_v27 }
 0x3bb   :  { %1986 = vmatpush1.bf16.msra.mxu1 %v5353_v56  ;;  %v5363_v56 = vld [vmem:[#allocation7 + $0x40] sm:$0xff]  }
 0x3bc   :  { %1987 = vmatprep.subr.bf16.mxu1 %v5561_v27 }
 0x3bf   :  { %1988 = vmatpush1.bf16.msra.mxu1 %v5354_v57  ;;  %v5365_v57 = vld [vmem:[#allocation7 + $0x48] sm:$0xff]  }
 0x3c0   :  { %4859 = vmatprep.subr.bf16.mxu1 %v5562_v22 }
 0x425   :  { %v1800_v58 = vpop.f32.mrb[16].mxu0 }
 0x426   :  { %v1802_v59 = vpop.f32.mrb[17].mxu0 }
 0x427   :  { %v1803_v60 = vpop.f32.mrb[18].mxu0  ;;  %v5367_v59 = vld [vmem:[#allocation7 + $0x50] sm:$0xff]  }
 0x428   :  { %v1805_v61 = vpop.f32.mrb[19].mxu0 }
 0x42d   :  { %v1487_v62 = vpop.f32.mrb[24].mxu1  ;;  %v2053_v63 = vpop.f32.mrb[20].mxu0 }
 0x42e   :  { %v1489_v0 = vpop.f32.mrb[25].mxu1  ;;  %v2055_v1 = vpop.f32.mrb[21].mxu0 }
 0x42f   :  { %v1490_v2 = vpop.f32.mrb[26].mxu1  ;;  %v2057_v3 = vpop.f32.mrb[22].mxu0  ;;  %v5371_v0 = vld [vmem:[#allocation7 + $0x60] sm:$0xff]  }
 0x430   :  { %v1492_v4 = vpop.f32.mrb[27].mxu1  ;;  %v2062_v5 = vpack.c.bf16 %v2057_v3, %v2053_v63  ;;  %v2059_v6 = vpop.f32.mrb[23].mxu0 }
 0x431   :  { %v2063_v7 = vpack.c.bf16 %v2059_v6, %v2055_v1 }
 0x433   :  { %4448 = vmatprep.mubr.msk.bf16.mxu0 %vm131_vm0, %v2063_v7 }
 0x434   :  { %2197 = vmatmul.mubr.bf16.vlgmr.msra.gmra.mrb[24].mxu0 %v2062_v5 }
 0x435   :  { %4899 = vmatprep.mubr.msk.bf16.mxu0 %vm5563_vm3, %v5562_v22  ;;  %4888 = vmatpush3.bf16.msra.mxu0 %v5357_v24 }
 0x436   :  { %4889 = vmatprep.subr.bf16.mxu0 %v5562_v22 }
 0x439   :  { %4890 = vmatpush3.bf16.msra.mxu0 %v5358_v25 }
 0x43a   :  { %4891 = vmatprep.subr.bf16.mxu0 %v5562_v22 }
 0x43d   :  { %4892 = vmatpush3.bf16.msra.mxu0 %v5360_v26 }
 0x43e   :  { %4893 = vmatprep.subr.bf16.mxu0 %v5562_v22 }
 0x441   :  { %4894 = vmatpush3.bf16.msra.mxu0 %v5362_v28 }
 0x442   :  { %4895 = vmatprep.subr.bf16.mxu0 %v5562_v22 }
 0x445   :  { %4896 = vmatpush3.bf16.msra.mxu0 %v5364_v29 }
 0x446   :  { %4897 = vmatprep.subr.bf16.mxu0 %v5562_v22 }
 0x45d   :  { %v1603_v27 = vpop.f32.mrb[28].mxu1 }
 0x45e   :  { %v1604_v8 = vadd.f32 %v1603_v27, %v1487_v62  ;;  %v1605_v9 = vpop.f32.mrb[29].mxu1  ;;  %v5369_v27 = vld [vmem:[#allocation5 + $0x10] sm:$0xff]  }
 0x45f   :  { %v1606_v10 = vpop.f32.mrb[30].mxu1  ;;  %v5372_v9 = vld [vmem:[#allocation7 + $0x68] sm:$0xff]  }
 0x460   :  { %v1607_v11 = vadd.f32 %v1606_v10, %v1490_v2  ;;  %v1608_v12 = vpop.f32.mrb[31].mxu1  ;;  %v1807_v13 = vadd.f32 %v1800_v58, %v1604_v8  ;;  %v5366_v58 = vld [vmem:[#allocation7 + $0x28] sm:$0xff]   ;;  %v5370_v8 = vld [vmem:[#allocation5 + $0x18] sm:$0xff]  }
 0x461   :  { %4898 = vmatpush3.bf16.msra.mxu0 %v5366_v58  ;;  %v5373_v10 = vld [vmem:[#allocation7 + $0x70] sm:$0xff]   ;;  %v5375_v12 = vld [vmem:[#allocation7 + $0x78] sm:$0xff]  }
 0x462   :  { %v1808_v14 = vadd.f32 %v1803_v60, %v1607_v11  ;;  %4909 = vmatprep.subr.bf16.mxu0 %v5562_v22  ;;  %v5368_v60 = vld [vmem:[#allocation7 + $0x58] sm:$0xff]   ;;  %v5374_v11 = vld [vmem:[#allocation7 + $0x90] sm:$0xff]  }
 0x465   :  { %v1854_v15 = vpop.f32.mrb[32].mxu1 }
 0x466   :  { %v1856_v16 = vpop.f32.mrb[33].mxu1 }
 0x467   :  { %v1858_v17 = vpop.f32.mrb[34].mxu1 }
 0x468   :  { %v1863_v18 = vpack.c.bf16 %v1858_v17, %v1854_v15  ;;  %v1860_v19 = vpop.f32.mrb[35].mxu1  ;;  %v5378_v15 = vld [vmem:[#allocation7 + $0xa0] sm:$0xff]   ;;  %v5380_v17 = vld [vmem:[#allocation7 + $0xa8] sm:$0xff]  }
 0x469   :  { %v1864_v20 = vpack.c.bf16 %v1860_v19, %v1856_v16  ;;  %v5379_v16 = vld [vmem:[#allocation7 + $0x88] sm:$0xff]   ;;  %v5382_v19 = vld [vmem:[#allocation7 + $0xb8] sm:$0xff]  }
 0x46b   :  { %4407 = vmatprep.mubr.msk.bf16.mxu1 %vm131_vm0, %v1864_v20 }
 0x46c   :  { %1998 = vmatmul.mubr.bf16.vlgmr.msra.gmra.mrb[36].mxu1 %v1863_v18  ;;  %v5381_v18 = vld [vmem:[#allocation7 + $0xb0] sm:$0xff]  }
 0x46d   :  { %4861 = vmatprep.mubr.msk.bf16.mxu1 %vm5563_vm3, %v5562_v22 }
 0x507   :  { %v2198_v30 = vpop.f32.mrb[24].mxu0 }
 0x508   :  { %v2200_v31 = vpop.f32.mrb[25].mxu0 }
 0x509   :  { %v2201_v32 = vpop.f32.mrb[26].mxu0 }
 0x50a   :  { %v2203_v33 = vpop.f32.mrb[27].mxu0 }
 0x53f   :  { %v1999_v34 = vpop.f32.mrb[36].mxu1 }
 0x540   :  { %v2006_v35 = vadd.f32 %v1999_v34, %v1807_v13  ;;  %v2001_v23 = vpop.f32.mrb[37].mxu1  ;;  %v5376_v13 = vld [vmem:[#allocation7 + $0x98] sm:$0xff]  }
 0x541   :  { %v2002_v37 = vpop.f32.mrb[38].mxu1 }
 0x542   :  { %v2205_v36 = vadd.f32 %v2198_v30, %v2006_v35  ;;  %v2007_v38 = vadd.f32 %v2002_v37, %v1808_v14  ;;  %v2004_v39 = vpop.f32.mrb[39].mxu1  ;;  %v5377_v14 = vld [vmem:[#allocation7 + $0x80] sm:$0xff]  }
 0x543   :  { %v5383_v39 = vld [vmem:[#allocation5 + $0x20] sm:$0xff]  }
 0x544   :  { %v2214_v40 = vadd.f32 %v4449_v21, %v2205_v36  ;;  %v2206_v41 = vadd.f32 %v2201_v32, %v2007_v38 }
 0x546   :  { %v2216_v42 = vmul.f32 0.5, %v2214_v40  ;;  %v2215_v43 = vadd.f32 %v4449_v21, %v2206_v41  ;;  %v5384_v41 = vld [vmem:[#allocation7 + $0xc0] sm:$0xff]  }
 0x548   :  { %5454 = vtanh.f32 %v2216_v42  ;;  %v2217_v44 = vmul.f32 0.5, %v2215_v43 }
 0x54a   :  { %5456 = vtanh.f32 %v2217_v44  ;;  %v5385_v44 = vld [vmem:[#allocation7 + $0xc8] sm:$0xff]  }
 0x552   :  { %v5455_v45 = vpop.eup %5454 }
 0x553   :  { %v2220_v46 = vadd.f32 1.0, %v5455_v45  ;;  %v5386_v45 = vld [vmem:[#allocation7 + $0xd0] sm:$0xff]  }
 0x554   :  { %v5457_v47 = vpop.eup %5456 }
 0x555   :  { %v2221_v48 = vadd.f32 1.0, %v5457_v47  ;;  %v2222_v49 = vmul.f32 0.5, %v2220_v46  ;;  %v5387_v46 = vld [vmem:[#allocation7 + $0xd8] sm:$0xff]   ;;  %v5388_v47 = vld [vmem:[#allocation7 + $0xe0] sm:$0xff]  }
 0x557   :  { %v2223_v50 = vmul.f32 0.5, %v2221_v48  ;;  %v5389_v48 = vld [vmem:[#allocation7 + $0xe8] sm:$0xff]  }
 0x559   :  { %v6319_v51 = vpack.c.bf16 %v2223_v50, %v2222_v49 }
 0x55b   :  { %4860 = vmatpush3.bf16.msra.mxu1 %v6319_v51 }
 0x55c   :  { %4865 = vmatprep.subr.bf16.mxu1 %v5562_v22 }
 0x55e   :  { %4862 = vmatmul.mubr.msk.bf16.vlgmr.msra.gmra.mrb[40].mxu1 %vm2232_vm4, %v5355_v52 }
 0x55f   :  { %4866 = vmatpush3.bf16.msra.mxu1 %v6319_v51  ;;  %4867 = vmatprep.mubr.msk.bf16.mxu1 %vm5563_vm3, %v5562_v22 }
 0x560   :  { %4871 = vmatprep.subr.bf16.mxu1 %v5562_v22 }
 0x566   :  { %4868 = vmatmul.mubr.msk.bf16.vlgmr.msra.gmra.mrb[44].mxu1 %vm2232_vm4, %v5356_v53 }
 0x567   :  { %4872 = vmatpush3.bf16.msra.mxu1 %v5359_v54  ;;  %4883 = vmatprep.mubr.msk.bf16.mxu1 %vm5563_vm3, %v5562_v22 }
 0x568   :  { %4873 = vmatprep.subr.bf16.mxu1 %v5562_v22 }
 0x56b   :  { %4874 = vmatpush3.bf16.msra.mxu1 %v5361_v55 }
 0x56c   :  { %4875 = vmatprep.subr.bf16.mxu1 %v5562_v22 }
 0x56f   :  { %4876 = vmatpush3.bf16.msra.mxu1 %v5363_v56 }
 0x570   :  { %4877 = vmatprep.subr.bf16.mxu1 %v5562_v22 }
 0x573   :  { %4878 = vmatpush3.bf16.msra.mxu1 %v5365_v57 }
 0x574   :  { %4879 = vmatprep.subr.bf16.mxu1 %v5562_v22 }
 0x577   :  { %4880 = vmatpush3.bf16.msra.mxu1 %v5367_v59 }
 0x578   :  { %4881 = vmatprep.subr.bf16.mxu1 %v5562_v22 }
 0x57b   :  { %4882 = vmatpush3.bf16.msra.mxu1 %v5368_v60 }
 0x57c   :  { %4903 = vmatprep.subr.bf16.mxu1 %v5562_v22 }
 0x631   :  { %v2270_v61 = vpop.f32.mrb[40].mxu1 }
 0x632   :  { %v4863_v62 = vpop.f32.mrb[41].mxu1 }
 0x633   :  { %v2273_v63 = vpop.f32.mrb[42].mxu1 }
 0x634   :  { %v2277_v1 = vpack.c.bf16 %v2273_v63, %v2270_v61  ;;  %v4864_v2 = vpop.f32.mrb[43].mxu1 }
 0x635   :  { %v5390_v2 = vld [vmem:[%s6694_s11] sm:$0xff]  }
 0x636   :  { %4900 = vmatmul.mubr.msk.bf16.vlgmr.msra.gmra.mrb[28].mxu0 %vm346_vm1, %v2277_v1 }
 0x637   :  { %4910 = vmatpush3.bf16.msra.mxu0 %v5371_v0  ;;  %4921 = vmatprep.mubr.msk.bf16.mxu0 %vm5563_vm3, %v5562_v22 }
 0x638   :  { %4911 = vmatprep.subr.bf16.mxu0 %v5562_v22 }
 0x639   :  { %v2335_v3 = vpop.f32.mrb[44].mxu1 }
 0x63a   :  { %v4869_v4 = vpop.f32.mrb[45].mxu1 }
 0x63b   :  { %v2338_v5 = vpop.f32.mrb[46].mxu1  ;;  %4912 = vmatpush3.bf16.msra.mxu0 %v5372_v9  ;;  %v5393_v4 = vld [vmem:[%s6694_s11 + $0x10] sm:$0xff]  }
 0x63c   :  { %v2342_v6 = vpack.c.bf16 %v2338_v5, %v2335_v3  ;;  %v4870_v7 = vpop.f32.mrb[47].mxu1  ;;  %4913 = vmatprep.subr.bf16.mxu0 %v5562_v22  ;;  %v5391_v3 = vld [vmem:[%s6694_s11 + $0x8] sm:$0xff]   ;;  %v5395_v5 = vld [vmem:[%s6694_s11 + $0x18] sm:$0xff]  }
 0x63e   :  { %4884 = vmatmul.mubr.msk.bf16.vlgmr.msra.gmra.mrb[48].mxu1 %vm346_vm1, %v2342_v6  ;;  %v5397_v6 = vld [vmem:[%s6694_s11 + $0x20] sm:$0xff]  }
 0x63f   :  { %4904 = vmatpush3.bf16.msra.mxu1 %v6319_v51  ;;  %4905 = vmatprep.mubr.msk.bf16.mxu1 %vm5563_vm3, %v5562_v22 }
 0x640   :  { %4925 = vmatprep.subr.bf16.mxu1 %v5562_v22  ;;  %4914 = vmatpush3.bf16.msra.mxu0 %v5373_v10 }
 0x641   :  { %4915 = vmatprep.subr.bf16.mxu0 %v5562_v22 }
 0x644   :  { %4916 = vmatpush3.bf16.msra.mxu0 %v5375_v12 }
 0x645   :  { %4917 = vmatprep.subr.bf16.mxu0 %v5562_v22 }
 0x646   :  { %4906 = vmatmul.mubr.msk.bf16.vlgmr.msra.gmra.mrb[52].mxu1 %vm2232_vm4, %v5369_v27  ;;  %v4495_v27 = vld [vmem:[%s6692_s9] ss:$0 sm:$0xff] }
 0x647   :  { %4926 = vmatpush3.bf16.msra.mxu1 %v6319_v51  ;;  %4927 = vmatprep.mubr.msk.bf16.mxu1 %vm5563_vm3, %v5562_v22 }
 0x648   :  { %4931 = vmatprep.subr.bf16.mxu1 %v5562_v22  ;;  %4918 = vmatpush3.bf16.msra.mxu0 %v5377_v14 }
 0x649   :  { %4919 = vmatprep.subr.bf16.mxu0 %v5562_v22 }
 0x64c   :  { %4920 = vmatpush3.bf16.msra.mxu0 %v5379_v16 }
 0x64d   :  { %4947 = vmatprep.subr.bf16.mxu0 %v5562_v22 }
 0x64e   :  { %4928 = vmatmul.mubr.msk.bf16.vlgmr.msra.gmra.mrb[56].mxu1 %vm2232_vm4, %v5370_v8 }
 0x64f   :  { %4943 = vmatprep.mubr.msk.bf16.mxu1 %vm5563_vm3, %v5562_v22  ;;  %4932 = vmatpush3.bf16.msra.mxu1 %v5374_v11 }
 0x650   :  { %4933 = vmatprep.subr.bf16.mxu1 %v5562_v22 }
 0x653   :  { %4934 = vmatpush3.bf16.msra.mxu1 %v5376_v13 }
 0x654   :  { %4935 = vmatprep.subr.bf16.mxu1 %v5562_v22 }
 0x657   :  { %4936 = vmatpush3.bf16.msra.mxu1 %v5378_v15 }
 0x658   :  { %4937 = vmatprep.subr.bf16.mxu1 %v5562_v22 }
 0x65b   :  { %4938 = vmatpush3.bf16.msra.mxu1 %v5380_v17 }
 0x65c   :  { %4939 = vmatprep.subr.bf16.mxu1 %v5562_v22 }
 0x65f   :  { %4940 = vmatpush3.bf16.msra.mxu1 %v5381_v18 }
 0x660   :  { %4941 = vmatprep.subr.bf16.mxu1 %v5562_v22 }
 0x663   :  { %4942 = vmatpush3.bf16.msra.mxu1 %v5382_v19 }
 0x664   :  { %4969 = vmatprep.subr.bf16.mxu1 %v5562_v22 }
 0x709   :  { %v2509_v20 = vpop.f32.mrb[28].mxu0 }
 0x70a   :  { %v4901_v24 = vpop.f32.mrb[29].mxu0 }
 0x70b   :  { %v2512_v25 = vpop.f32.mrb[30].mxu0 }
 0x70c   :  { %v4902_v26 = vpop.f32.mrb[31].mxu0 }
 0x711   :  { %v2429_v28 = vpop.f32.mrb[48].mxu1 }
 0x712   :  { %v2510_v29 = vadd.f32 %v2509_v20, %v2429_v28  ;;  %v4885_v30 = vpop.f32.mrb[49].mxu1  ;;  %v2978_v28 = vld [vmem:[%s6693_s10] sm:$0x1] }
 0x713   :  { %v2432_v31 = vpop.f32.mrb[50].mxu1  ;;  %v5392_v30 = vld [vmem:[%s6694_s11 + $0x30] sm:$0xff]  }
 0x714   :  { %v2513_v32 = vadd.f32 %v2512_v25, %v2432_v31  ;;  %v4886_v33 = vpop.f32.mrb[51].mxu1  ;;  %v5394_v31 = vld [vmem:[%s6694_s11 + $0x38] sm:$0xff]  }
 0x715   :  { %v5398_v33 = vld [vmem:[%s6694_s11 + $0x48] sm:$0xff]  }
 0x719   :  { %v2561_v34 = vpop.f32.mrb[52].mxu1 }
 0x71a   :  { %v4907_v35 = vpop.f32.mrb[53].mxu1 }
 0x71b   :  { %v2564_v23 = vpop.f32.mrb[54].mxu1  ;;  %v5400_v35 = vld [vmem:[%s6694_s11 + $0x50] sm:$0xff]  }
 0x71c   :  { %v2568_v21 = vpack.c.bf16 %v2564_v23, %v2561_v34  ;;  %v4908_v37 = vpop.f32.mrb[55].mxu1  ;;  %v5399_v34 = vld [vmem:[%s6694_s11 + $0x28] sm:$0xff]   ;;  %v5401_v23 = vld [vmem:[%s6694_s11 + $0x58] sm:$0xff]  }
 0x71d   :  { %v5402_v37 = vld [vmem:[%s6694_s11 + $0x60] sm:$0xff]  }
 0x71e   :  { %4922 = vmatmul.mubr.msk.bf16.vlgmr.msra.gmra.mrb[32].mxu0 %vm346_vm1, %v2568_v21 }
 0x71f   :  { %4948 = vmatpush3.bf16.msra.mxu0 %v6319_v51  ;;  %4949 = vmatprep.mubr.msk.bf16.mxu0 %vm5563_vm3, %v5562_v22 }
 0x720   :  { %4953 = vmatprep.subr.bf16.mxu0 %v5562_v22 }
 0x721   :  { %v2709_v36 = vpop.f32.mrb[56].mxu1 }
 0x722   :  { %v4929_v38 = vpop.f32.mrb[57].mxu1 }
 0x723   :  { %v2712_v40 = vpop.f32.mrb[58].mxu1 }
 0x724   :  { %v2716_v42 = vpack.c.bf16 %v2712_v40, %v2709_v36  ;;  %v4930_v43 = vpop.f32.mrb[59].mxu1 }
 0x726   :  { %4944 = vmatmul.mubr.msk.bf16.vlgmr.msra.gmra.mrb[60].mxu1 %vm346_vm1, %v2716_v42  ;;  %4950 = vmatmul.mubr.msk.bf16.vlgmr.msra.gmra.mrb[36].mxu0 %vm2232_vm4, %v5383_v39 }
 0x727   :  { %4954 = vmatpush3.bf16.msra.mxu0 %v5384_v41  ;;  %4965 = vmatprep.mubr.msk.bf16.mxu0 %vm5563_vm3, %v5562_v22  ;;  %v5403_v41 = vld [vmem:[%s6694_s11 + $0x68] sm:$0xff]  }
 0x728   :  { %4955 = vmatprep.subr.bf16.mxu0 %v5562_v22  ;;  %4971 = vmatprep.mubr.msk.bf16.mxu1 %vm5563_vm3, %v5562_v22 }
 0x72b   :  { %4956 = vmatpush3.bf16.msra.mxu0 %v5385_v44 }
 0x72c   :  { %4957 = vmatprep.subr.bf16.mxu0 %v5562_v22 }
 0x72f   :  { %4958 = vmatpush3.bf16.msra.mxu0 %v5386_v45 }
 0x730   :  { %4959 = vmatprep.subr.bf16.mxu0 %v5562_v22 }
 0x733   :  { %4960 = vmatpush3.bf16.msra.mxu0 %v5387_v46 }
 0x734   :  { %4961 = vmatprep.subr.bf16.mxu0 %v5562_v22 }
 0x737   :  { %4962 = vmatpush3.bf16.msra.mxu0 %v5388_v47  ;;  %v4525_v47 = vld [vmem:[%s6693_s10 + $0x2] sm:$0x1] }
 0x738   :  { %4963 = vmatprep.subr.bf16.mxu0 %v5562_v22 }
 0x73b   :  { %4964 = vmatpush3.bf16.msra.mxu0 %v5389_v48  ;;  %v4546_v48 = vld [vmem:[%s6693_s10 + $0x3] sm:$0x1] }
 0x73c   :  { %4997 = vmatprep.subr.bf16.mxu0 %v5562_v22 }
 0x7f1   :  { %v2655_v49 = vpop.f32.mrb[32].mxu0 }
 0x7f2   :  { %v2662_v50 = vadd.f32 %v2655_v49, %v2510_v29  ;;  %v4923_v51 = vpop.f32.mrb[33].mxu0  ;;  %v4497_v29 = vld [vmem:[%s6693_s10 + $0x1] sm:$0x1]  ;;  %v5404_v49 = vld [vmem:[%s6694_s11 + $0x70] sm:$0xff]  }
 0x7f3   :  { %v2658_v52 = vpop.f32.mrb[34].mxu0  ;;  %v5406_v51 = vld [vmem:[%s6694_s11 + $0x78] sm:$0xff]  }
 0x7f4   :  { %v2663_v53 = vadd.f32 %v2658_v52, %v2513_v32  ;;  %v4924_v54 = vpop.f32.mrb[35].mxu0  ;;  %v5396_v32 = vld [vmem:[%s6694_s11 + $0x40] sm:$0xff]   ;;  %v5407_v52 = vld [vmem:[%s6694_s11 + $0x98] sm:$0xff]  }
 0x7f5   :  { %v5409_v54 = vld [vmem:[%s6694_s11 + $0xa0] sm:$0xff]  }
 0x7f9   :  { %v2803_v55 = vpop.f32.mrb[60].mxu1  ;;  %v2857_v56 = vpop.f32.mrb[36].mxu0 }
 0x7fa   :  { %v2810_v57 = vadd.f32 %v2803_v55, %v2662_v50  ;;  %v4945_v58 = vpop.f32.mrb[61].mxu1  ;;  %v4951_v59 = vpop.f32.mrb[37].mxu0  ;;  %v5405_v50 = vld [vmem:[%s6694_s11 + $0x90] sm:$0xff]   ;;  %v5410_v55 = vld [vmem:[%s6694_s11 + $0x88] sm:$0xff]  }
 0x7fb   :  { %v2806_v60 = vpop.f32.mrb[62].mxu1  ;;  %v2860_v61 = vpop.f32.mrb[38].mxu0  ;;  %v5413_v58 = vld [vmem:[%s6694_s11 + $0xb8] sm:$0xff]  }
 0x7fc   :  { %v2811_v62 = vadd.f32 %v2806_v60, %v2663_v53  ;;  %v2864_v63 = vpack.c.bf16 %v2860_v61, %v2857_v56  ;;  %v4952_v0 = vpop.f32.mrb[39].mxu0  ;;  %v4946_v1 = vpop.f32.mrb[63].mxu1  ;;  %v5408_v53 = vld [vmem:[%s6694_s11 + $0x80] sm:$0xff]   ;;  %v5411_v56 = vld [vmem:[%s6694_s11 + $0xa8] sm:$0xff]  }
 0x7fe   :  { %4966 = vmatmul.mubr.msk.bf16.vlgmr.msra.gmra.mrb[40].mxu0 %vm346_vm1, %v2864_v63 }
 0x7ff   :  { %5009 = vmatprep.mubr.msk.bf16.mxu0 %vm5563_vm3, %v5562_v22  ;;  %4998 = vmatpush3.bf16.msra.mxu0 %v5390_v2 }
 0x800   :  { %4999 = vmatprep.subr.bf16.mxu0 %v5562_v22 }
 0x803   :  { %5000 = vmatpush3.bf16.msra.mxu0 %v5391_v3 }
 0x804   :  { %5001 = vmatprep.subr.bf16.mxu0 %v5562_v22 }
 0x807   :  { %5002 = vmatpush3.bf16.msra.mxu0 %v5393_v4 }
 0x808   :  { %5003 = vmatprep.subr.bf16.mxu0 %v5562_v22 }
 0x80b   :  { %5004 = vmatpush3.bf16.msra.mxu0 %v5395_v5 }
 0x80c   :  { %5005 = vmatprep.subr.bf16.mxu0 %v5562_v22 }
 0x80f   :  { %5006 = vmatpush3.bf16.msra.mxu0 %v5397_v6 }
 0x810   :  { %5007 = vmatprep.subr.bf16.mxu0 %v5562_v22 }
 0x813   :  { %5008 = vmatpush3.bf16.msra.mxu0 %v5399_v34 }
 0x814   :  { %5019 = vmatprep.subr.bf16.mxu0 %v5562_v22 }
 0x8d1   :  { %v2951_v7 = vpop.f32.mrb[40].mxu0 }
 0x8d2   :  { %v2958_v8 = vadd.f32 %v2951_v7, %v2810_v57  ;;  %v4967_v9 = vpop.f32.mrb[41].mxu0  ;;  %v5412_v57 = vld [vmem:[%s6694_s11 + $0xb0] sm:$0xff]  }
 0x8d3   :  { %v2954_v10 = vpop.f32.mrb[42].mxu0  ;;  %v4567_v9 = vld [vmem:[%s6693_s10 + $0x4] sm:$0x1] }
 0x8d4   :  { %v2967_v11 = vadd.f32 %v4495_v27, %v2958_v8  ;;  %v2959_v12 = vadd.f32 %v2954_v10, %v2811_v62  ;;  %v4968_v13 = vpop.f32.mrb[43].mxu0 }
 0x8d6   :  { %v2969_v14 = vmul.f32 0.5, %v2967_v11  ;;  %v2968_v15 = vadd.f32 %v4495_v27, %v2959_v12  ;;  %v5414_v12 = vld [vmem:[%s6694_s11 + $0xc0] sm:$0xff]  }
 0x8d8   :  { %5458 = vtanh.f32 %v2969_v14  ;;  %v2970_v16 = vmul.f32 0.5, %v2968_v15  ;;  %v5415_v15 = vld [vmem:[%s6694_s11 + $0xc8] sm:$0xff]  }
 0x8da   :  { %5460 = vtanh.f32 %v2970_v16  ;;  %v4588_v16 = vld [vmem:[%s6693_s10 + $0x5] sm:$0x1] }
 0x8e2   :  { %v5459_v17 = vpop.eup %5458 }
 0x8e3   :  { %v2973_v18 = vadd.f32 1.0, %v5459_v17  ;;  %v5417_v17 = vld [vmem:[%s6694_s11 + $0xf0] sm:$0xff]  }
 0x8e4   :  { %v5461_v19 = vpop.eup %5460 }
 0x8e5   :  { %v2974_v20 = vadd.f32 1.0, %v5461_v19  ;;  %v2975_v24 = vmul.f32 0.5, %v2973_v18  ;;  %v5416_v18 = vld [vmem:[%s6694_s11 + $0xd0] sm:$0xff]   ;;  %v5419_v19 = vld [vmem:[%s6694_s11 + $0xf8] sm:$0xff]  }
 0x8e7   :  { %v2976_v25 = vmul.f32 0.5, %v2974_v20  ;;  %v5418_v20 = vld [vmem:[%s6694_s11 + $0xd8] sm:$0xff]  }
 0x8e9   :  { %v6409_v26 = vpack.c.bf16 %v2976_v25, %v2975_v24  ;;  %v5420_v24 = vld [vmem:[%s6694_s11 + $0xe0] sm:$0xff]  }
 0x8ea   :  { %v5421_v25 = vld [vmem:[%s6694_s11 + $0x100] sm:$0xff]  }
 0x8eb   :  { %4970 = vmatpush3.bf16.msra.mxu1 %v6409_v26 }
 0x8ec   :  { %4975 = vmatprep.subr.bf16.mxu1 %v5562_v22 }
 0x8ee   :  { %4972 = vmatmul.mubr.msk.bf16.vlgmr.msra.gmra.mrb[64].mxu1 %vm2232_vm4, %v2978_v28  ;;  %v5422_v28 = vld [vmem:[%s6694_s11 + $0xe8] sm:$0xff]  }
 0x8ef   :  { %4976 = vmatpush3.bf16.msra.mxu1 %v6409_v26  ;;  %4977 = vmatprep.mubr.msk.bf16.mxu1 %vm5563_vm3, %v5562_v22 }
 0x8f0   :  { %4981 = vmatprep.subr.bf16.mxu1 %v5562_v22 }
 0x8f6   :  { %4978 = vmatmul.mubr.msk.bf16.vlgmr.msra.gmra.mrb[68].mxu1 %vm2232_vm4, %v4497_v29  ;;  %v5423_v29 = vld [vmem:[%s6694_s11 + $0x108] sm:$0xff]  }
 0x8f7   :  { %4982 = vmatpush3.bf16.msra.mxu1 %v5392_v30  ;;  %4993 = vmatprep.mubr.msk.bf16.mxu1 %vm5563_vm3, %v5562_v22  ;;  %v5424_v30 = vld [vmem:[%s6694_s11 + $0x110] sm:$0xff]  }
 0x8f8   :  { %4983 = vmatprep.subr.bf16.mxu1 %v5562_v22 }
 0x8fb   :  { %4984 = vmatpush3.bf16.msra.mxu1 %v5394_v31  ;;  %v5425_v31 = vld [vmem:[%s6694_s11 + $0x118] sm:$0xff]  }
 0x8fc   :  { %4985 = vmatprep.subr.bf16.mxu1 %v5562_v22 }
 0x8ff   :  { %4986 = vmatpush3.bf16.msra.mxu1 %v5396_v32 }
 0x900   :  { %4987 = vmatprep.subr.bf16.mxu1 %v5562_v22 }
 0x903   :  { %4988 = vmatpush3.bf16.msra.mxu1 %v5398_v33 }
 0x904   :  { %4989 = vmatprep.subr.bf16.mxu1 %v5562_v22 }
 0x907   :  { %4990 = vmatpush3.bf16.msra.mxu1 %v5400_v35 }
 0x908   :  { %4991 = vmatprep.subr.bf16.mxu1 %v5562_v22 }
 0x90b   :  { %4992 = vmatpush3.bf16.msra.mxu1 %v5401_v23 }
 0x90c   :  { %5013 = vmatprep.subr.bf16.mxu1 %v5562_v22 }
 0x9c1   :  { %v3016_v21 = vpop.f32.mrb[64].mxu1 }
 0x9c2   :  { %v3022_v36 = vpack.c.bf16 %v3016_v21, %v3016_v21  ;;  %v4973_v38 = vpop.f32.mrb[65].mxu1 }
 0x9c3   :  { %v3019_v39 = vpop.f32.mrb[66].mxu1 }
 0x9c4   :  { %v4974_v40 = vpop.f32.mrb[67].mxu1  ;;  %5010 = vmatmul.mubr.msk.bf16.vlgmr.msra.gmra.mrb[44].mxu0 %vm346_vm1, %v3022_v36 }
 0x9c5   :  { %5020 = vmatpush3.bf16.msra.mxu0 %v5402_v37  ;;  %5031 = vmatprep.mubr.msk.bf16.mxu0 %vm5563_vm3, %v5562_v22 }
 0x9c6   :  { %5021 = vmatprep.subr.bf16.mxu0 %v5562_v22 }
 0x9c9   :  { %v3074_v42 = vpop.f32.mrb[68].mxu1  ;;  %5022 = vmatpush3.bf16.msra.mxu0 %v5403_v41 }
 0x9ca   :  { %v3080_v43 = vpack.c.bf16 %v3074_v42, %v3074_v42  ;;  %v4979_v44 = vpop.f32.mrb[69].mxu1  ;;  %5023 = vmatprep.subr.bf16.mxu0 %v5562_v22 }
 0x9cb   :  { %v3077_v45 = vpop.f32.mrb[70].mxu1 }
 0x9cc   :  { %4994 = vmatmul.mubr.msk.bf16.vlgmr.msra.gmra.mrb[72].mxu1 %vm346_vm1, %v3080_v43  ;;  %v4980_v46 = vpop.f32.mrb[71].mxu1 }
 0x9cd   :  { %5014 = vmatpush3.bf16.msra.mxu1 %v6409_v26  ;;  %5015 = vmatprep.mubr.msk.bf16.mxu1 %vm5563_vm3, %v5562_v22  ;;  %v4609_v46 = vld [vmem:[%s6693_s10 + $0x6] sm:$0x1] }
 0x9ce   :  { %5035 = vmatprep.subr.bf16.mxu1 %v5562_v22  ;;  %5024 = vmatpush3.bf16.msra.mxu0 %v5404_v49  ;;  %v5426_v49 = vld [vmem:[%s6694_s11 + $0x120] sm:$0xff]  }
 0x9cf   :  { %5025 = vmatprep.subr.bf16.mxu0 %v5562_v22 }
 0x9d2   :  { %5026 = vmatpush3.bf16.msra.mxu0 %v5406_v51 }
 0x9d3   :  { %5027 = vmatprep.subr.bf16.mxu0 %v5562_v22 }
 0x9d4   :  { %5016 = vmatmul.mubr.msk.bf16.vlgmr.msra.gmra.mrb[76].mxu1 %vm2232_vm4, %v4525_v47 }
 0x9d5   :  { %5036 = vmatpush3.bf16.msra.mxu1 %v6409_v26  ;;  %5037 = vmatprep.mubr.msk.bf16.mxu1 %vm5563_vm3, %v5562_v22 }
 0x9d6   :  { %5041 = vmatprep.subr.bf16.mxu1 %v5562_v22  ;;  %5028 = vmatpush3.bf16.msra.mxu0 %v5408_v53  ;;  %v4630_v53 = vld [vmem:[%s6693_s10 + $0x7] sm:$0x1] }
 0x9d7   :  { %5029 = vmatprep.subr.bf16.mxu0 %v5562_v22 }
 0x9da   :  { %5030 = vmatpush3.bf16.msra.mxu0 %v5410_v55  ;;  %v5430_v55 = vld [vmem:[%s6694_s11 + $0x138] sm:$0xff]  }
 0x9db   :  { %5057 = vmatprep.subr.bf16.mxu0 %v5562_v22 }
 0x9dc   :  { %5038 = vmatmul.mubr.msk.bf16.vlgmr.msra.gmra.mrb[80].mxu1 %vm2232_vm4, %v4546_v48 }
 0x9dd   :  { %5053 = vmatprep.mubr.msk.bf16.mxu1 %vm5563_vm3, %v5562_v22  ;;  %5042 = vmatpush3.bf16.msra.mxu1 %v5405_v50 }
 0x9de   :  { %5043 = vmatprep.subr.bf16.mxu1 %v5562_v22 }
 0x9e1   :  { %5044 = vmatpush3.bf16.msra.mxu1 %v5407_v52  ;;  %v5427_v52 = vld [vmem:[%s6694_s11 + $0x128] sm:$0xff]  }
 0x9e2   :  { %5045 = vmatprep.subr.bf16.mxu1 %v5562_v22 }
 0x9e5   :  { %5046 = vmatpush3.bf16.msra.mxu1 %v5409_v54  ;;  %v5428_v54 = vld [vmem:[%s6694_s11 + $0x130] sm:$0xff]  }
 0x9e6   :  { %5047 = vmatprep.subr.bf16.mxu1 %v5562_v22 }
 0x9e9   :  { %5048 = vmatpush3.bf16.msra.mxu1 %v5411_v56  ;;  %v5431_v56 = vld [vmem:[%s6694_s11 + $0x158] sm:$0xff]  }
 0x9ea   :  { %5049 = vmatprep.subr.bf16.mxu1 %v5562_v22 }
 0x9ed   :  { %5050 = vmatpush3.bf16.msra.mxu1 %v5412_v57  ;;  %v5432_v57 = vld [vmem:[%s6694_s11 + $0x140] sm:$0xff]  }
 0x9ee   :  { %5051 = vmatprep.subr.bf16.mxu1 %v5562_v22 }
 0x9f1   :  { %5052 = vmatpush3.bf16.msra.mxu1 %v5413_v58  ;;  %v5433_v58 = vld [vmem:[%s6694_s11 + $0x160] sm:$0xff]  }
 0x9f2   :  { %5079 = vmatprep.subr.bf16.mxu1 %v5562_v22 }
 0xa97   :  { %v3246_v59 = vpop.f32.mrb[44].mxu0 }
 0xa98   :  { %v5011_v60 = vpop.f32.mrb[45].mxu0 }
 0xa99   :  { %v3249_v61 = vpop.f32.mrb[46].mxu0  ;;  %v5435_v60 = vld [vmem:[%s6694_s11 + $0x168] sm:$0xff]  }
 0xa9a   :  { %v5012_v62 = vpop.f32.mrb[47].mxu0  ;;  %v5436_v61 = vld [vmem:[%s6694_s11 + $0x170] sm:$0xff]  }
 0xa9b   :  { %v5437_v62 = vld [vmem:[%s6694_s11 + $0x178] sm:$0xff]  }
 0xa9f   :  { %v3167_v63 = vpop.f32.mrb[72].mxu1 }
 0xaa0   :  { %v6525_v0 = vadd.f32 %v3246_v59, %v3167_v63  ;;  %v4995_v1 = vpop.f32.mrb[73].mxu1  ;;  %v5434_v59 = vld [vmem:[%s6694_s11 + $0x148] sm:$0xff]  }
 0xaa1   :  { %v3170_v2 = vpop.f32.mrb[74].mxu1 }
 0xaa2   :  { %v4996_v3 = vpop.f32.mrb[75].mxu1 }
 0xaa7   :  { %v3291_v4 = vpop.f32.mrb[76].mxu1 }
 0xaa8   :  { %v3297_v5 = vpack.c.bf16 %v3291_v4, %v3291_v4  ;;  %v5017_v6 = vpop.f32.mrb[77].mxu1 }
 0xaa9   :  { %v3294_v7 = vpop.f32.mrb[78].mxu1 }
 0xaaa   :  { %5032 = vmatmul.mubr.msk.bf16.vlgmr.msra.gmra.mrb[48].mxu0 %vm346_vm1, %v3297_v5  ;;  %v5018_v27 = vpop.f32.mrb[79].mxu1 }
 0xaab   :  { %5058 = vmatpush3.bf16.msra.mxu0 %v6409_v26  ;;  %5059 = vmatprep.mubr.msk.bf16.mxu0 %vm5563_vm3, %v5562_v22 }
 0xaac   :  { %5063 = vmatprep.subr.bf16.mxu0 %v5562_v22 }
 0xaaf   :  { %v3430_v8 = vpop.f32.mrb[80].mxu1 }
 0xab0   :  { %v3436_v10 = vpack.c.bf16 %v3430_v8, %v3430_v8  ;;  %v5039_v11 = vpop.f32.mrb[81].mxu1 }
 0xab1   :  { %v3433_v13 = vpop.f32.mrb[82].mxu1 }
 0xab2   :  { %5054 = vmatmul.mubr.msk.bf16.vlgmr.msra.gmra.mrb[84].mxu1 %vm346_vm1, %v3436_v10  ;;  %5060 = vmatmul.mubr.msk.bf16.vlgmr.msra.gmra.mrb[52].mxu0 %vm2232_vm4, %v4567_v9  ;;  %v5040_v14 = vpop.f32.mrb[83].mxu1 }
 0xab3   :  { %5080 = vmatpush3.bf16.msra.mxu1 %v6409_v26  ;;  %5081 = vmatprep.mubr.msk.bf16.mxu1 %vm5563_vm3, %v5562_v22 }
 0xab4   :  { %5064 = vmatpush3.bf16.msra.mxu0 %v5414_v12  ;;  %5085 = vmatprep.subr.bf16.mxu1 %v5562_v22 }
 0xab5   :  { %5065 = vmatprep.subr.bf16.mxu0 %v5562_v22  ;;  %5075 = vmatprep.mubr.msk.bf16.mxu0 %vm5563_vm3, %v5562_v22 }
 0xab8   :  { %5066 = vmatpush3.bf16.msra.mxu0 %v5415_v15 }
 0xab9   :  { %5067 = vmatprep.subr.bf16.mxu0 %v5562_v22 }
 0xaba   :  { %5082 = vmatmul.mubr.msk.bf16.vlgmr.msra.gmra.mrb[88].mxu1 %vm2232_vm4, %v4588_v16 }
 0xabb   :  { %5086 = vmatpush3.bf16.msra.mxu1 %v5417_v17  ;;  %5097 = vmatprep.mubr.msk.bf16.mxu1 %vm5563_vm3, %v5562_v22 }
 0xabc   :  { %5068 = vmatpush3.bf16.msra.mxu0 %v5416_v18  ;;  %5087 = vmatprep.subr.bf16.mxu1 %v5562_v22 }
 0xabd   :  { %5069 = vmatprep.subr.bf16.mxu0 %v5562_v22 }
 0xabf   :  { %5088 = vmatpush3.bf16.msra.mxu1 %v5419_v19 }
 0xac0   :  { %5070 = vmatpush3.bf16.msra.mxu0 %v5418_v20  ;;  %5089 = vmatprep.subr.bf16.mxu1 %v5562_v22 }
 0xac1   :  { %5071 = vmatprep.subr.bf16.mxu0 %v5562_v22 }
 0xac3   :  { %5090 = vmatpush3.bf16.msra.mxu1 %v5421_v25 }
 0xac4   :  { %5072 = vmatpush3.bf16.msra.mxu0 %v5420_v24  ;;  %5091 = vmatprep.subr.bf16.mxu1 %v5562_v22 }
 0xac5   :  { %5073 = vmatprep.subr.bf16.mxu0 %v5562_v22 }
 0xac7   :  { %5092 = vmatpush3.bf16.msra.mxu1 %v5423_v29 }
 0xac8   :  { %5074 = vmatpush3.bf16.msra.mxu0 %v5422_v28  ;;  %5093 = vmatprep.subr.bf16.mxu1 %v5562_v22  ;;  %v4651_v28 = vld [vmem:[%s6695_s12] ss:$0 sm:$0xff] }
 0xac9   :  { %5101 = vmatprep.subr.bf16.mxu0 %v5562_v22 }
 0xacb   :  { %5094 = vmatpush3.bf16.msra.mxu1 %v5424_v30 }
 0xacc   :  { %5095 = vmatprep.subr.bf16.mxu1 %v5562_v22 }
 0xacf   :  { %5096 = vmatpush3.bf16.msra.mxu1 %v5425_v31 }
 0xad0   :  { %5123 = vmatprep.subr.bf16.mxu1 %v5562_v22 }
 0xb7d   :  { %v3384_v32 = vpop.f32.mrb[48].mxu0 }
 0xb7e   :  { %v3390_v33 = vadd.f32 %v3384_v32, %v6525_v0  ;;  %v5033_v34 = vpop.f32.mrb[49].mxu0 }
 0xb7f   :  { %v3387_v35 = vpop.f32.mrb[50].mxu0 }
 0xb80   :  { %v5034_v23 = vpop.f32.mrb[51].mxu0 }
 0xb85   :  { %v3523_v21 = vpop.f32.mrb[84].mxu1  ;;  %v3569_v37 = vpop.f32.mrb[52].mxu0 }
 0xb86   :  { %v3529_v36 = vadd.f32 %v3523_v21, %v3390_v33  ;;  %v3575_v38 = vpack.c.bf16 %v3569_v37, %v3569_v37  ;;  %v5055_v39 = vpop.f32.mrb[85].mxu1  ;;  %v5061_v40 = vpop.f32.mrb[53].mxu0 }
 0xb87   :  { %v3526_v41 = vpop.f32.mrb[86].mxu1  ;;  %v3572_v42 = vpop.f32.mrb[54].mxu0 }
 0xb88   :  { %5076 = vmatmul.mubr.msk.bf16.vlgmr.msra.gmra.mrb[56].mxu0 %vm346_vm1, %v3575_v38  ;;  %v5056_v43 = vpop.f32.mrb[87].mxu1  ;;  %v5062_v44 = vpop.f32.mrb[55].mxu0 }
 0xb89   :  { %5102 = vmatpush3.bf16.msra.mxu0 %v6409_v26  ;;  %5103 = vmatprep.mubr.msk.bf16.mxu0 %vm5563_vm3, %v5562_v22 }
 0xb8a   :  { %5107 = vmatprep.subr.bf16.mxu0 %v5562_v22 }
 0xb8d   :  { %v3708_v45 = vpop.f32.mrb[88].mxu1 }
 0xb8e   :  { %v3714_v47 = vpack.c.bf16 %v3708_v45, %v3708_v45  ;;  %v5083_v48 = vpop.f32.mrb[89].mxu1 }
 0xb8f   :  { %v3711_v50 = vpop.f32.mrb[90].mxu1 }
 0xb90   :  { %5098 = vmatmul.mubr.msk.bf16.vlgmr.msra.gmra.mrb[92].mxu1 %vm346_vm1, %v3714_v47  ;;  %5104 = vmatmul.mubr.msk.bf16.vlgmr.msra.gmra.mrb[60].mxu0 %vm2232_vm4, %v4609_v46  ;;  %v5084_v51 = vpop.f32.mrb[91].mxu1 }
 0xb91   :  { %5124 = vmatpush3.bf16.msra.mxu1 %v6409_v26  ;;  %5125 = vmatprep.mubr.msk.bf16.mxu1 %vm5563_vm3, %v5562_v22  ;;  %v5429_v26 = vld [vmem:[%s6694_s11 + $0x150] sm:$0xff]  }
 0xb92   :  { %5108 = vmatpush3.bf16.msra.mxu0 %v5426_v49  ;;  %5129 = vmatprep.subr.bf16.mxu1 %v5562_v22 }
 0xb93   :  { %5109 = vmatprep.subr.bf16.mxu0 %v5562_v22  ;;  %5119 = vmatprep.mubr.msk.bf16.mxu0 %vm5563_vm3, %v5562_v22 }
 0xb96   :  { %5110 = vmatpush3.bf16.msra.mxu0 %v5427_v52 }
 0xb97   :  { %5111 = vmatprep.subr.bf16.mxu0 %v5562_v22 }
 0xb98   :  { %5126 = vmatmul.mubr.msk.bf16.vlgmr.msra.gmra.mrb[96].mxu1 %vm2232_vm4, %v4630_v53 }
 0xb99   :  { %5130 = vmatpush3.bf16.msra.mxu1 %v5429_v26  ;;  %5141 = vmatprep.mubr.msk.bf16.mxu1 %vm5563_vm3, %v5562_v22 }
 0xb9a   :  { %5112 = vmatpush3.bf16.msra.mxu0 %v5428_v54  ;;  %5131 = vmatprep.subr.bf16.mxu1 %v5562_v22 }
 0xb9b   :  { %5113 = vmatprep.subr.bf16.mxu0 %v5562_v22 }
 0xb9d   :  { %5132 = vmatpush3.bf16.msra.mxu1 %v5431_v56 }
 0xb9e   :  { %5114 = vmatpush3.bf16.msra.mxu0 %v5430_v55  ;;  %5133 = vmatprep.subr.bf16.mxu1 %v5562_v22 }
 0xb9f   :  { %5115 = vmatprep.subr.bf16.mxu0 %v5562_v22 }
 0xba1   :  { %5134 = vmatpush3.bf16.msra.mxu1 %v5433_v58 }
 0xba2   :  { %5116 = vmatpush3.bf16.msra.mxu0 %v5432_v57  ;;  %5135 = vmatprep.subr.bf16.mxu1 %v5562_v22 }
 0xba3   :  { %5117 = vmatprep.subr.bf16.mxu0 %v5562_v22 }
 0xba5   :  { %5136 = vmatpush3.bf16.msra.mxu1 %v5435_v60 }
 0xba6   :  { %5118 = vmatpush3.bf16.msra.mxu0 %v5434_v59  ;;  %5137 = vmatprep.subr.bf16.mxu1 %v5562_v22 }
 0xba9   :  { %5138 = vmatpush3.bf16.msra.mxu1 %v5436_v61 }
 0xbaa   :  { %5139 = vmatprep.subr.bf16.mxu1 %v5562_v22 }
 0xbad   :  { %5140 = vmatpush3.bf16.msra.mxu1 %v5437_v62 }
 0xc5b   :  { %v3662_v63 = vpop.f32.mrb[56].mxu0 }
 0xc5c   :  { %v3668_v0 = vadd.f32 %v3662_v63, %v3529_v36  ;;  %v5077_v1 = vpop.f32.mrb[57].mxu0 }
 0xc5d   :  { %v3665_v2 = vpop.f32.mrb[58].mxu0 }
 0xc5e   :  { %v5078_v3 = vpop.f32.mrb[59].mxu0 }
 0xc63   :  { %v3801_v4 = vpop.f32.mrb[92].mxu1  ;;  %v3847_v5 = vpop.f32.mrb[60].mxu0 }
 0xc64   :  { %v3807_v6 = vadd.f32 %v3801_v4, %v3668_v0  ;;  %v3853_v7 = vpack.c.bf16 %v3847_v5, %v3847_v5  ;;  %v5099_v27 = vpop.f32.mrb[93].mxu1  ;;  %v5105_v8 = vpop.f32.mrb[61].mxu0 }
 0xc65   :  { %v3804_v9 = vpop.f32.mrb[94].mxu1  ;;  %v3850_v10 = vpop.f32.mrb[62].mxu0 }
 0xc66   :  { %5120 = vmatmul.mubr.msk.bf16.vlgmr.msra.gmra.mrb[64].mxu0 %vm346_vm1, %v3853_v7  ;;  %v5100_v22 = vpop.f32.mrb[95].mxu1  ;;  %v5106_v11 = vpop.f32.mrb[63].mxu0 }
 0xc6b   :  { %v3986_v12 = vpop.f32.mrb[96].mxu1 }
 0xc6c   :  { %v3992_v13 = vpack.c.bf16 %v3986_v12, %v3986_v12  ;;  %v5127_v14 = vpop.f32.mrb[97].mxu1 }
 0xc6d   :  { %v3989_v15 = vpop.f32.mrb[98].mxu1 }
 0xc6e   :  { %5142 = vmatmul.mubr.msk.bf16.vlgmr.msra.gmra.mrb[100].mxu1 %vm346_vm1, %v3992_v13  ;;  %v5128_v16 = vpop.f32.mrb[99].mxu1 }
 0xd39   :  { %v3940_v17 = vpop.f32.mrb[64].mxu0 }
 0xd3a   :  { %v3946_v18 = vadd.f32 %v3940_v17, %v3807_v6  ;;  %v5121_v19 = vpop.f32.mrb[65].mxu0 }
 0xd3b   :  { %v3943_v20 = vpop.f32.mrb[66].mxu0 }
 0xd3c   :  { %v5122_v24 = vpop.f32.mrb[67].mxu0 }
 0xd41   :  { %v4079_v25 = vpop.f32.mrb[100].mxu1 }
 0xd42   :  { %v4085_v29 = vadd.f32 %v4079_v25, %v3946_v18  ;;  %v5143_v30 = vpop.f32.mrb[101].mxu1 }
 0xd43   :  { %v4082_v31 = vpop.f32.mrb[102].mxu1 }
 0xd44   :  { %v4093_v32 = vadd.f32 %v4651_v28, %v4085_v29  ;;  %v5144_v33 = vpop.f32.mrb[103].mxu1 }
 0xd46   :  { %4095 = vst.msk [vmem:[#allocation8] sm:$0x3] %vm4094_vm5, %v4093_v32 }
 0xd47   :  { %5539 = shalt.err (!%p5536_p0)
}
 0xd48   :  { %s5540_s12 = scalar_lea.hbm %s6696_s13, 32 }
 0xd49   :  { %p5541_p1 = scmp.ne.s32.totalorder %s6696_s13, %s5540_s12  ;;  %p5544_p2 = scmp.lt.u32.totalorder %s5540_s12, %s6696_s13 }
 0xd4b   :  { %p5546_p3 = pnand %p5544_p2, %p5541_p1 }
 0xd4d   :  { %5549 = shalt.err (!%p5546_p3)
}
 0xd4e   :  { %4105 = dma.vmem_to_hbm [thread:$0]  %s4103_s24, 32, %s6696_s13, [#allocation4]  }
 0xd4f   :  { %5554 = dma.done.wait [#allocation4], 32  }
 0xd50   :  { %5555 = vsyncadd [#allocation4], 4294967264 }
 0xd51   :  { %4109 = vsyncpa [#allocation3], 1 }
 0xd52   :  { %4110 = vsyncpa [#allocation6], 1 }
 0xd53   :  { %4111 = vsyncpa [#allocation4], 1 }

</bundles_post_ra>
